<compile_context>
chip_gen: v5e
topology: v5e:2x2
jax: 0.10.0
libtpu: 0.0.40
codegen_flags: <defaults>
</compile_context>

<pallas_src>
import functools

import jax
import jax.numpy as jnp
from jax import lax
from jax.experimental import pallas as pl
from jax.experimental.pallas import tpu as pltpu

NUM_CLASSES = 20   # get_classes_list() -> PASCAL VOC: 20 classes
FEAT = 512         # per-backbone high-level feature width (512 + 512 = 1024)
K1 = 3 * 3 * 3     # backbone-1 patch width (RGB, 3x3)
K2 = 1 * 3 * 3     # backbone-2 patch width (1 channel, 3x3)
KCAT = K1 + K2     # fused patch width = 36

MAX_TILE_HW = 2048  # rows per grid step; sweep 512/1024/2048 (all fit v7x VMEM)


def _round_up(x, m):
    return ((x + m - 1) // m) * m


def _fused_kernel(p_ref, wbd_ref, bc_ref, wf_ref, bf_ref, out_ref, acc_ref,
                  *, hw, tile_hw, sub, inv_hw, need_mask):
    """Grid = (batch, row_tile). acc_ref: (1, 2*FEAT) f32 running row-sum."""
    t = pl.program_id(1)

    @pl.when(t == 0)
    def _init():
        acc_ref[...] = jnp.zeros_like(acc_ref)

    n_sub = tile_hw // sub
    base = t * tile_hw

    def chunk(c, partial):
        # Fused backbone conv-as-matmul on a SUB-row sub-chunk:
        # (SUB, 36) @ (36, 1024) on the MXU, bf16 operands, f32 accumulation.
        r0 = pl.multiple_of(c * sub, sub)
        p = p_ref[0, pl.ds(r0, sub), :]
        y = jnp.dot(p, wbd_ref[...], preferred_element_type=jnp.float32)
        y = jnp.maximum(y + bc_ref[...], 0.0)
        if need_mask:
            # Zero-padded patch rows still yield relu(bias) != 0 -> mask them
            # out of the global-average-pool sum.
            rows = base + r0 + lax.broadcasted_iota(jnp.int32, (sub, 1), 0)
            y = jnp.where(rows < hw, y, 0.0)
        # Partial global-average-pool: cross-sublane reduce, carried in vregs.
        return partial + jnp.sum(y, axis=0, keepdims=True)

    partial = lax.fori_loop(0, n_sub, chunk,
                            jnp.zeros((1, 2 * FEAT), jnp.float32),
                            unroll=True)
    acc_ref[...] += partial

    @pl.when(t == pl.num_programs(1) - 1)
    def _finalize():
        feat = acc_ref[...] * inv_hw                       # (1, 1024) mean
        out = (jnp.dot(feat, wf_ref[...], preferred_element_type=jnp.float32)
               + bf_ref[...])                              # (1, NUM_CLASSES)
        out_ref[...] = out.reshape(out_ref.shape).astype(out_ref.dtype)


def _im2col_3x3(x_nchw, out_dtype=jnp.float32):
    """(B, C, H, W) -> (B, H*W, C*9) patches, SAME padding, stride 1.

    Last-dim ordering is (c, kh, kw)-major, matching w.reshape(FEAT, C*9).
    Single fused producer: pad + 9 shifted slices + transpose + cast, written
    once (bf16 for the kernel path).
    """
    B, C, H, W = x_nchw.shape
    xp = jnp.pad(x_nchw, ((0, 0), (0, 0), (1, 1), (1, 1)))
    cols = []
    for i in range(3):
        for j in range(3):
            cols.append(xp[:, :, i:i + H, j:j + W])        # (B, C, H, W)
    p = jnp.stack(cols, axis=2)                            # (B, C, 9, H, W)
    p = p.transpose(0, 3, 4, 1, 2).reshape(B, H * W, C * 9)
    return p.astype(out_dtype)


def init_params(key):
    k1, k2, k3 = jax.random.split(key, 3)
    return {
        # backbone 1 consumes RGB (3 channels); backbone 2 consumes 1 channel
        "w_conv1": jax.random.normal(k1, (FEAT, 3, 3, 3), jnp.float32) * 0.05,
        "b_conv1": jnp.linspace(-0.1, 0.1, FEAT, dtype=jnp.float32),
        "w_conv2": jax.random.normal(k2, (FEAT, 1, 3, 3), jnp.float32) * 0.05,
        "b_conv2": jnp.linspace(0.1, -0.1, FEAT, dtype=jnp.float32),
        # nn.Linear(1024, num_classes): weight (NC, 1024), bias (NC,)
        "w_fc": jax.random.normal(k3, (NUM_CLASSES, 2 * FEAT), jnp.float32) * 0.02,
        "b_fc": jnp.linspace(-0.05, 0.05, NUM_CLASSES, dtype=jnp.float32),
    }


def two_networks_forward(params, inputs1, inputs2):
    B, _, H, W = inputs1.shape
    HW = H * W

    # forward's channel slicing, fused into one 4-channel im2col pass so the
    # bf16 patch slab [27 RGB-taps | 9 ch3-taps] is produced/written once.
    x1 = inputs1[:, 0:3, :, :]    # RGB branch
    x2 = inputs2[:, 3:4, :, :]    # 4th-channel branch
    xsel = jnp.concatenate([x1, x2], axis=1)                # (B, 4, H, W)
    patches = _im2col_3x3(xsel, jnp.bfloat16)               # (B, HW, 36) bf16

    # Row tiling over HW: multiple of 128, capped so that (double-buffered
    # patch tiles) + (SUB x 1024 f32 temps) + resident weights stay well under
    # the 32 MiB scoped VMEM on every generation (incl. v7x's 64 MiB physical).
    TILE_HW = min(MAX_TILE_HW, _round_up(HW, 128))
    n_tiles = pl.cdiv(HW, TILE_HW)
    HW_pad = n_tiles * TILE_HW
    if HW_pad != HW:
        patches = jnp.pad(patches, ((0, 0), (0, HW_pad - HW), (0, 0)))
    SUB = 256 if TILE_HW % 256 == 0 else 128                # divides TILE_HW

    # Block-diagonal fused conv weight (36, 1024), bf16.
    w1 = params["w_conv1"].reshape(FEAT, K1).T              # (27, 512)
    w2 = params["w_conv2"].reshape(FEAT, K2).T              # (9,  512)
    wbd = jnp.zeros((KCAT, 2 * FEAT), jnp.float32)
    wbd = wbd.at[:K1, :FEAT].set(w1).at[K1:, FEAT:].set(w2)
    wbd = wbd.astype(jnp.bfloat16)

    bc = jnp.concatenate([params["b_conv1"], params["b_conv2"]]).reshape(1, 2 * FEAT)
    wf = params["w_fc"].T                                   # (1024, NC) f32
    bf = params["b_fc"].reshape(1, NUM_CLASSES)

    kernel = functools.partial(
        _fused_kernel, hw=HW, tile_hw=TILE_HW, sub=SUB,
        inv_hw=1.0 / float(HW), need_mask=(HW_pad != HW))

    out = pl.pallas_call(
        kernel,
        out_shape=jax.ShapeDtypeStruct((B, 1, NUM_CLASSES), jnp.float32),
        grid_spec=pltpu.PrefetchScalarGridSpec(
            num_scalar_prefetch=0,
            grid=(B, n_tiles),
            in_specs=[
                # streaming patch tiles
                pl.BlockSpec((1, TILE_HW, KCAT), lambda b, t: (b, t, 0)),
                # resident (constant index_map) weights / biases
                pl.BlockSpec((KCAT, 2 * FEAT), lambda b, t: (0, 0)),
                pl.BlockSpec((1, 2 * FEAT), lambda b, t: (0, 0)),
                pl.BlockSpec((2 * FEAT, NUM_CLASSES), lambda b, t: (0, 0)),
                pl.BlockSpec((1, NUM_CLASSES), lambda b, t: (0, 0)),
            ],
            out_specs=pl.BlockSpec((1, 1, NUM_CLASSES), lambda b, t: (b, 0, 0)),
            scratch_shapes=[pltpu.VMEM((1, 2 * FEAT), jnp.float32)],
        ),
        compiler_params=pltpu.CompilerParams(
            dimension_semantics=("parallel", "arbitrary"),
            vmem_limit_bytes=32 * 1024 * 1024,
        ),
    )(patches, wbd, bc, wf, bf)
    return out.reshape(B, NUM_CLASSES)


def _reference(params, inputs1, inputs2):
    """Pure-JAX f32 reference of the intended forward."""
    x1 = inputs1[:, 0:3, :, :]
    x2 = inputs2[:, 3:4, :, :]
    p1 = _im2col_3x3(x1)                                    # (B, HW, 27)
    p2 = _im2col_3x3(x2)                                    # (B, HW, 9)
    w1 = params["w_conv1"].reshape(FEAT, K1).T
    w2 = params["w_conv2"].reshape(FEAT, K2).T
    f1 = jnp.maximum(p1 @ w1 + params["b_conv1"], 0.0).mean(axis=1)
    f2 = jnp.maximum(p2 @ w2 + params["b_conv2"], 0.0).mean(axis=1)
    feat = jnp.concatenate([f1, f2], axis=-1)               # (B, 1024)
    return feat @ params["w_fc"].T + params["b_fc"]


if __name__ == "__main__":
    key = jax.random.PRNGKey(0)
    kp, ka, kb = jax.random.split(key, 3)
    params = init_params(kp)

    inputs1 = jax.random.normal(ka, (2, 4, 16, 16), jnp.float32)
    inputs2 = jax.random.normal(kb, (2, 4, 16, 16), jnp.float32)

    out = two_networks_forward(params, inputs1, inputs2)
    out = jax.block_until_ready(out)
    assert out.shape == (2, NUM_CLASSES) and out.dtype == jnp.float32

    ref = _reference(params, inputs1, inputs2)
    # bf16 MXU operands vs f32 reference -> loose tolerance.
    assert jnp.allclose(out, ref, rtol=5e-2, atol=5e-2), (out, ref)

    # Exercise the cdiv + row-mask path (HW=15*13=195, not a multiple of 128).
    in1b = jax.random.normal(ka, (2, 4, 15, 13), jnp.float32)
    in2b = jax.random.normal(kb, (2, 4, 15, 13), jnp.float32)
    outb = jax.block_until_ready(two_networks_forward(params, in1b, in2b))
    refb = _reference(params, in1b, in2b)
    assert jnp.allclose(outb, refb, rtol=5e-2, atol=5e-2), (outb, refb)

    print("KERNEL_OK")
</pallas_src>

<mosaic_0001>
module attributes {stable_mosaic.version = 11 : i64} {
  func.func @_fused_kernel(%arg0: i32, %arg1: i32, %arg2: memref<1x256x36xbf16, #tpu.memory_space<vmem>>, %arg3: memref<36x1024xbf16, #tpu.memory_space<vmem>>, %arg4: memref<1x1024xf32, #tpu.memory_space<vmem>>, %arg5: memref<1024x20xf32, #tpu.memory_space<vmem>>, %arg6: memref<1x20xf32, #tpu.memory_space<vmem>>, %arg7: memref<1x1x20xf32, #tpu.memory_space<vmem>>, %arg8: memref<1x1024xf32, #tpu.memory_space<vmem>>) attributes {dimension_semantics = [#tpu.dimension_semantics<parallel>, #tpu.dimension_semantics<arbitrary>], iteration_bounds = array<i64: 2, 1>, scalar_prefetch = 0 : i64, scratch_operands = 1 : i64, tpu.core_type = #tpu.core_type<tc>, window_params = [{transform_indices = @transform_0, window_bounds = array<i64: 1, 256, 36>}, {pipeline_mode = #tpu.pipeline_mode<synchronous>, transform_indices = @transform_1, window_bounds = array<i64: 36, 1024>}, {pipeline_mode = #tpu.pipeline_mode<synchronous>, transform_indices = @transform_2, window_bounds = array<i64: 1, 1024>}, {pipeline_mode = #tpu.pipeline_mode<synchronous>, transform_indices = @transform_3, window_bounds = array<i64: 1024, 20>}, {pipeline_mode = #tpu.pipeline_mode<synchronous>, transform_indices = @transform_4, window_bounds = array<i64: 1, 20>}, {transform_indices = @transform_5, window_bounds = array<i64: 1, 1, 20>}]} {
    %c0_i32 = arith.constant 0 : i32
    %0 = arith.cmpi eq, %arg1, %c0_i32 : i32
    %1 = arith.extui %0 : i1 to i32
    %c0_i32_0 = arith.constant 0 : i32
    %2 = arith.cmpi ne, %1, %c0_i32_0 : i32
    scf.if %2 {
      %cst_16 = arith.constant 0.000000e+00 : f32
      %25 = vector.broadcast %cst_16 : f32 to vector<1x1024xf32>
      %c0_17 = arith.constant 0 : index
      %c0_18 = arith.constant 0 : index
      %26 = vector.load %arg8[%c0_17, %c0_18] : memref<1x1024xf32, #tpu.memory_space<vmem>>, vector<1x1024xf32>
      tpu.vector_store %arg8[%c0_17, %c0_18], %25 {strides = array<i32>} : memref<1x1024xf32, #tpu.memory_space<vmem>>, vector<1x1024xf32>,
    } else {
    }
    %cst = arith.constant 0.000000e+00 : f32
    %3 = vector.broadcast %cst : f32 to vector<1x1024xf32>
    %c0_i32_1 = arith.constant 0 : i32
    %c256_i32 = arith.constant 256 : i32
    %4 = arith.muli %c0_i32_1, %c256_i32 : i32
    %5 = tpu.assume_multiple %4, 256 : i32
    %c0 = arith.constant 0 : index
    %6 = arith.index_cast %5 : i32 to index
    %c0_2 = arith.constant 0 : index
    %7 = vector.load %arg2[%c0, %6, %c0_2] : memref<1x256x36xbf16, #tpu.memory_space<vmem>>, vector<1x256x36xbf16>
    %8 = vector.shape_cast %7 : vector<1x256x36xbf16> to vector<256x36xbf16>
    %c0_3 = arith.constant 0 : index
    %c0_4 = arith.constant 0 : index
    %9 = vector.load %arg3[%c0_3, %c0_4] : memref<36x1024xbf16, #tpu.memory_space<vmem>>, vector<36x1024xbf16>
    %cst_5 = arith.constant dense<0.000000e+00> : vector<256x1024xf32>
    %10 = tpu.matmul %8, %9, %cst_5 {dimension_numbers = #tpu.dot_dimension_numbers<[1], [0], [0], [1], [0, 0, 1, 1], [], []>} : vector<256x36xbf16>, vector<36x1024xbf16>, vector<256x1024xf32> -> vector<256x1024xf32>
    %c0_6 = arith.constant 0 : index
    %c0_7 = arith.constant 0 : index
    %11 = vector.load %arg4[%c0_6, %c0_7] : memref<1x1024xf32, #tpu.memory_space<vmem>>, vector<1x1024xf32>
    %12 = vector.broadcast %11 : vector<1x1024xf32> to vector<256x1024xf32>
    %13 = arith.addf %10, %12 : vector<256x1024xf32>
    %cst_8 = arith.constant 0.000000e+00 : f32
    %14 = vector.broadcast %cst_8 : f32 to vector<256x1024xf32>
    %15 = arith.maximumf %13, %14 : vector<256x1024xf32>
    %cst_9 = arith.constant dense<0.000000e+00> : vector<1024xf32>
    %16 = vector.multi_reduction <add>, %15, %cst_9 [0] : vector<256x1024xf32> to vector<1024xf32>
    %17 = vector.shape_cast %16 : vector<1024xf32> to vector<1x1024xf32>
    %18 = arith.addf %3, %17 : vector<1x1024xf32>
    %c1_i32 = arith.constant 1 : i32
    %c0_10 = arith.constant 0 : index
    %c0_11 = arith.constant 0 : index
    %19 = vector.load %arg8[%c0_10, %c0_11] : memref<1x1024xf32, #tpu.memory_space<vmem>>, vector<1x1024xf32>
    %20 = arith.addf %19, %18 : vector<1x1024xf32>
    %c0_12 = arith.constant 0 : index
    %c0_13 = arith.constant 0 : index
    %21 = vector.load %arg8[%c0_12, %c0_13] : memref<1x1024xf32, #tpu.memory_space<vmem>>, vector<1x1024xf32>
    tpu.vector_store %arg8[%c0_12, %c0_13], %20 {strides = array<i32>} : memref<1x1024xf32, #tpu.memory_space<vmem>>, vector<1x1024xf32>,
    %c0_i32_14 = arith.constant 0 : i32
    %22 = arith.cmpi eq, %arg1, %c0_i32_14 : i32
    %23 = arith.extui %22 : i1 to i32
    %c0_i32_15 = arith.constant 0 : i32
    %24 = arith.cmpi ne, %23, %c0_i32_15 : i32
    scf.if %24 {
      %c0_16 = arith.constant 0 : index
      %c0_17 = arith.constant 0 : index
      %25 = vector.load %arg8[%c0_16, %c0_17] : memref<1x1024xf32, #tpu.memory_space<vmem>>, vector<1x1024xf32>
      %cst_18 = arith.constant 3.906250e-03 : f32
      %26 = vector.broadcast %cst_18 : f32 to vector<1x1024xf32>
      %27 = arith.mulf %25, %26 : vector<1x1024xf32>
      %c0_19 = arith.constant 0 : index
      %c0_20 = arith.constant 0 : index
      %28 = vector.load %arg5[%c0_19, %c0_20] : memref<1024x20xf32, #tpu.memory_space<vmem>>, vector<1024x20xf32>
      %cst_21 = arith.constant dense<0.000000e+00> : vector<1x20xf32>
      %29 = tpu.matmul %27, %28, %cst_21 {dimension_numbers = #tpu.dot_dimension_numbers<[1], [0], [0], [1], [0, 0, 1, 1], [], []>} : vector<1x1024xf32>, vector<1024x20xf32>, vector<1x20xf32> -> vector<1x20xf32>
      %c0_22 = arith.constant 0 : index
      %c0_23 = arith.constant 0 : index
      %30 = vector.load %arg6[%c0_22, %c0_23] : memref<1x20xf32, #tpu.memory_space<vmem>>, vector<1x20xf32>
      %31 = arith.addf %29, %30 : vector<1x20xf32>
      %32 = vector.shape_cast %31 : vector<1x20xf32> to vector<1x1x20xf32>
      %c0_24 = arith.constant 0 : index
      %c0_25 = arith.constant 0 : index
      %c0_26 = arith.constant 0 : index
      %33 = vector.load %arg7[%c0_24, %c0_25, %c0_26] : memref<1x1x20xf32, #tpu.memory_space<vmem>>, vector<1x1x20xf32>
      tpu.vector_store %arg7[%c0_24, %c0_25, %c0_26], %32 {strides = array<i32>} : memref<1x1x20xf32, #tpu.memory_space<vmem>>, vector<1x1x20xf32>,
    } else {
    }
    return
  }
  func.func @transform_0(%arg0: i32, %arg1: i32) -> (i32, i32, i32) {
    %c0_i32 = arith.constant 0 : i32
    %c0_i32_0 = arith.constant 0 : i32
    return %arg0, %arg1, %c0_i32 : i32, i32, i32
  }
  func.func @transform_1(%arg0: i32, %arg1: i32) -> (i32, i32) {
    %c0_i32 = arith.constant 0 : i32
    %c0_i32_0 = arith.constant 0 : i32
    %c0_i32_1 = arith.constant 0 : i32
    return %c0_i32, %c0_i32_0 : i32, i32
  }
  func.func @transform_2(%arg0: i32, %arg1: i32) -> (i32, i32) {
    %c0_i32 = arith.constant 0 : i32
    %c0_i32_0 = arith.constant 0 : i32
    %c0_i32_1 = arith.constant 0 : i32
    return %c0_i32, %c0_i32_0 : i32, i32
  }
  func.func @transform_3(%arg0: i32, %arg1: i32) -> (i32, i32) {
    %c0_i32 = arith.constant 0 : i32
    %c0_i32_0 = arith.constant 0 : i32
    %c0_i32_1 = arith.constant 0 : i32
    return %c0_i32, %c0_i32_0 : i32, i32
  }
  func.func @transform_4(%arg0: i32, %arg1: i32) -> (i32, i32) {
    %c0_i32 = arith.constant 0 : i32
    %c0_i32_0 = arith.constant 0 : i32
    %c0_i32_1 = arith.constant 0 : i32
    return %c0_i32, %c0_i32_0 : i32, i32
  }
  func.func @transform_5(%arg0: i32, %arg1: i32) -> (i32, i32, i32) {
    %c0_i32 = arith.constant 0 : i32
    %c0_i32_0 = arith.constant 0 : i32
    %c0_i32_1 = arith.constant 0 : i32
    return %arg0, %c0_i32, %c0_i32_0 : i32, i32, i32
  }
}

</mosaic_0001>

<bundles_post_ra>
// kernel: tpu_custom_call.1
= control target key start
LH: loop header
LB: loop body
LE: loop exit
PB: predicated region body
PF: predicated region fallthrough
CT: control target
= control target key end

     0   :  { %10 = vsyncpa [#allocation4], 0  ;;  %s4011_s0 = inlined_call_operand.vmem [shape: bf16[2,256,36], index: 0, kind: input, shape index: {}]   ;;  %s4012_s1 = inlined_call_operand.vmem [shape: bf16[36,1024], index: 1, kind: input, shape index: {}]   ;;  %s4013_s2 = inlined_call_operand.vmem [shape: f32[1,1024], index: 2, kind: input, shape index: {}]   ;;  %s4014_s3 = inlined_call_operand.vmem [shape: f32[1024,20], index: 3, kind: input, shape index: {}]   ;;  %s4015_s4 = inlined_call_operand.vmem [shape: f32[1,20], index: 4, kind: input, shape index: {}]   ;;  %s4016_s5 = inlined_call_operand.hbm [shape: f32[2,1,20], index: 5, kind: output, shape index: {}]  }
   0x1   :  { %12 = vsyncpa [#allocation4 + $0x1], 0  ;;  %s2754_s18 = smov 0   ;;  %s2756_s19 = smov 0  }
   0x2   :  { %s2758_s20 = smov 0   ;;  %s2760_s21 = smov 0  }
   0x3   :  { %s2762_s22 = smov 0   ;;  %s2764_s23 = smov 0  }
   0x4 LB: > { %s2279_s24 = sadd.s32 4294967295, %s2722_s23   ;;  %s2280_s25 = sadd.s32 4294967294, %s2722_s23   ;;  %s2722_s23 = sphi %s2764_s23, %s18_s23   ;;  %s2718_s22 = sphi %s2762_s22, %s4023_s22   ;;  %s2714_s21 = sphi %s2760_s21, %s4022_s21   ;;  %s2710_s20 = sphi %s2758_s20, %s4021_s20   ;;  %s2706_s19 = sphi %s2756_s19, %s4020_s19   ;;  %s2702_s18 = sphi %s2754_s18, %s4019_s18  }
   0x5   : > { %s30_s26 = sadd.s32 1, %s2718_s22  ;;  %s149_s27 = sadd.s32 1, %s2710_s20 }
   0x6   : > { %p32_p0 = scmp.ge.s32.totalorder %s30_s26, 2  ;;  %p159_p1 = scmp.ne.s32.totalorder %s2710_s20, %s2706_s19 }
   0x7   : > { %p160_p2 = scmp.eq.s32.totalorder %s2279_s24, 1  ;;  %p165_p3 = scmp.ne.s32.totalorder %s2706_s19, %s2702_s18 }
   0x8   : > { %s4025_s26 = smov (%p32_p0, %s30_s26), 0  ;;  %p166_p5 = scmp.eq.s32.totalorder %s2280_s25, 1 }
   0x9   : > { %p2794_p4 = por %p160_p2, %p159_p1  ;;  %s146_s29 = ssub.s32 %s2718_s22, %s4025_s26 }
   0xa   : > { %p2283_p6 = scmp.ge.s32.totalorder %s2722_s23, 1  ;;  %p147_p7 = scmp.eq.s32.totalorder %s146_s29, 0 }
   0xb   : > { %p2801_p8 = por %p166_p5, %p165_p3  ;;  %p209_p9 = scmp.lt.s32.totalorder %s2722_s23, 3 }
   0xc   : > { %s2807_s6 = scalar_select %p147_p7, %s2710_s20, %s149_s27  }
   0xd   : > { %p210_p10 = pnand %p2283_p6, %p209_p9 }
   0xe   : > { %p241_p11 = scmp.lt.s32.totalorder (!%p210_p10), %s2714_s21, 1  ;;  %s238_s8 = sand.u32 (!%p210_p10), 1, %s2706_s19  }
   0xf   : > { %213 = sbr.rel (%p210_p10) target bundleno = 849 (0x351), region = 40  ;;  %s2206_s10 = scalar_lea.hbm (!%p210_p10), %s4016_s5, %s2714_s21 }
  0x10   : > { %s239_s11 = scalar_lea.vmem (!%p210_p10), [#allocation3], %s238_s8  ;;  %s2210_s13 = sshll.u32 (!%p210_p10), %s2206_s10, 4  ;;  %s2211_s13 = int_to_ptr.hbm [resolvable:$true] %s2210_s13 }
  0x11   : > { %s2208_s12 = sshll.u32 (!%p210_p10), %s239_s11, 4  ;;  %s2198_s14 = scalar_lea.sflag (!%p210_p10), [#allocation4], %s238_s8  ;;  %s2209_s12 = int_to_ptr.vmem [resolvable:$true] %s2208_s12 }
  0x12   : > { %s2658_s15 = sshra.s32 (!%p210_p10), %s2211_s13, 4  ;;  %s2659_s15 = int_to_ptr.hbm [resolvable:$true] %s2658_s15 }
  0x13   : > { %s2660_s16 = scalar_lea.hbm (!%p210_p10), %s2659_s15, 1  ;;  %p2665_p1 = scmp.lt.s32.totalorder (!%p210_p10), %s2659_s15, %s4016_s5 }
  0x14   : > { %v304_v0 = vld [vmem:[%s4012_s1 + $0x80] sm:$0x33]  ;;  %vm555_vm0 = vcmask 1041408   ;;  %v305_v1 = vld [vmem:[%s4012_s1 + $0x88] sm:$0x33]  ;;  %s242_s7 = scalar_select %p241_p11, %s2714_s21, 1 }
  0x15   : > { %v458_v2 = vunpack.c.l.b16 %v304_v0  ;;  %v459_v3 = vunpack.c.h.b16 %v304_v0  ;;  %v460_v4 = vunpack.c.l.b16 %v305_v1  ;;  %v461_v5 = vunpack.c.h.b16 %v305_v1  ;;  %v2384_v6 = vld [vmem:[%s4012_s1 + $0x40] sm:$0xf]  ;;  %v2569_v8 = vld [vmem:[%s4012_s1 + $0x44] sm:$0xf]  ;;  %v2392_v14 = vld [vmem:[%s4012_s1 + $0x48] sm:$0xf]  ;;  %p2661_p12 = scmp.ne.s32.totalorder %s2659_s15, %s2660_s16 }
  0x16   : > { %v2573_v7 = vld [vmem:[%s4012_s1 + $0x5c] sm:$0xf0]  ;;  %v2386_v13 = vld [vmem:[%s4012_s1 + $0x60] sm:$0xf0]  ;;  %v2574_v15 = vld [vmem:[%s4012_s1 + $0x64] sm:$0xf0] }
  0x17   : > { %v482_v9 = vpack.c.b16 %v458_v2, %v458_v2  ;;  %v483_v10 = vpack.c.b16 %v459_v3, %v459_v3  ;;  %v484_v11 = vpack.c.b16 %v460_v4, %v460_v4  ;;  %v485_v12 = vpack.c.b16 %v461_v5, %v461_v5  ;;  %v2570_v16 = vld [vmem:[%s4012_s1 + $0x4c] sm:$0xf]  ;;  %v2352_v18 = vld [vmem:[%s4012_s1] sm:$0xf]  ;;  %v2561_v26 = vld [vmem:[%s4012_s1 + $0x4] sm:$0xf]  ;;  %p2662_p13 = pnand %p2661_p12, %p2794_p4 }
  0x18   : > { %v2394_v17 = vld [vmem:[%s4012_s1 + $0x68] sm:$0xf0]  ;;  %v2565_v23 = vld [vmem:[%s4012_s1 + $0x1c] sm:$0xf0]  ;;  %v2385_v24 = vor.u32 %v2573_v7, %v2384_v6  ;;  %v2389_v25 = vor.u32 %v2569_v8, %v2386_v13  ;;  %v2354_v27 = vld [vmem:[%s4012_s1 + $0x20] sm:$0xf0]  ;;  %v2393_v29 = vor.u32 %v2574_v15, %v2392_v14 }
  0x19   : > { %v557_v19 = vsel %vm555_vm0, %v482_v9, 0  ;;  %v560_v20 = vsel %vm555_vm0, %v483_v10, 0  ;;  %v563_v21 = vsel %vm555_vm0, %v484_v11, 0  ;;  %v566_v22 = vsel %vm555_vm0, %v485_v12, 0  ;;  %v2360_v28 = vld [vmem:[%s4012_s1 + $0x8] sm:$0xf]  ;;  %p2663_p0 = pneg %p2662_p13 }
  0x1a   : > { %585 = vmatpush.bf16.msra.mxu0 %v557_v19  ;;  %674 = vmatpush.bf16.msra.mxu1 %v560_v20  ;;  %v2397_v30 = vor.u32 %v2570_v16, %v2394_v17  ;;  %v307_v31 = vld [vmem:[%s4012_s1 + $0x98] sm:$0x33]  ;;  %v306_v32 = vld [vmem:[%s4012_s1 + $0x90] sm:$0x33]  ;;  %v2566_v33 = vld [vmem:[%s4012_s1 + $0x24] sm:$0xf0]  ;;  %v2353_v40 = vor.u32 %v2565_v23, %v2352_v18  ;;  %v2357_v41 = vor.u32 %v2561_v26, %v2354_v27 }
  0x1b   : > { %763 = vmatpush.bf16.msra.mxu2 %v563_v21  ;;  %852 = vmatpush.bf16.msra.mxu3 %v566_v22  ;;  %v2562_v34 = vld [vmem:[%s4012_s1 + $0xc] sm:$0xf]  ;;  %v464_v36 = vunpack.c.l.b16 %v307_v31  ;;  %v465_v37 = vunpack.c.h.b16 %v307_v31  ;;  %v462_v38 = vunpack.c.l.b16 %v306_v32  ;;  %v463_v39 = vunpack.c.h.b16 %v306_v32  ;;  %s2544_s24 = sshll.u32 %s242_s7, 7  ;;  %v2408_v56 = vld [vmem:[%s4012_s1 + $0x58] sm:$0xf]  ;;  %v308_v9 = vld [vmem:[%s4013_s2] sm:$0xff] }
  0x1c   : > { %v2362_v35 = vld [vmem:[%s4012_s1 + $0x28] sm:$0xf0]  ;;  %s2880_s29 = scalar_lea.vmem %s4011_s0, %s2544_s24  ;;  %v2361_v44 = vor.u32 %v2566_v33, %v2360_v28  ;;  %vm506_vm1 = vcmask 293888   ;;  %v2576_v57 = vld [vmem:[%s4012_s1 + $0x74] sm:$0xf0]  ;;  %v2984_v12 = vperm.slane %v308_v9, 0 }
  0x1d   : > { %v488_v42 = vpack.c.b16 %v464_v36, %v464_v36  ;;  %v489_v43 = vpack.c.b16 %v465_v37, %v465_v37  ;;  %v2365_v45 = vor.u32 %v2562_v34, %v2362_v35  ;;  %v486_v46 = vpack.c.b16 %v462_v38, %v462_v38  ;;  %v2883_v48 = vld [vmem:[%s2880_s29] sm:$0xff]  ;;  %v2898_v53 = vld [vmem:[%s2880_s29 + $0x8] sm:$0xff]  ;;  %v2909_v54 = vld [vmem:[%s2880_s29 + $0x10] sm:$0xff]  ;;  %s2664_s24 = scalar_lea.hbm %s4016_s5, 2 }
  0x1e   : > { %586 = vmatpush.bf16.msra.mxu0 %v2385_v24  ;;  %675 = vmatpush.bf16.msra.mxu1 %v2389_v25  ;;  %v487_v47 = vpack.c.b16 %v463_v39, %v463_v39  ;;  %v2920_v55 = vld [vmem:[%s2880_s29 + $0x18] sm:$0xff]  ;;  %v2409_v59 = vor.u32 %v2576_v57, %v2408_v56  ;;  %v2400_v61 = vld [vmem:[%s4012_s1 + $0x50] sm:$0xf]  ;;  %v2571_v1 = vld [vmem:[%s4012_s1 + $0x54] sm:$0xf]  ;;  %v2986_v13 = vperm.slane %v308_v9, 1  ;;  %p2666_p2 = scmp.lt.s32.totalorder %s2664_s24, %s2660_s16 }
  0x1f   : > { %764 = vmatpush.bf16.msra.mxu2 %v2393_v29  ;;  %853 = vmatpush.bf16.msra.mxu3 %v2397_v30  ;;  %v575_v49 = vsel %vm555_vm0, %v488_v42, 0  ;;  %v578_v50 = vsel %vm555_vm0, %v489_v43, 0  ;;  %v569_v51 = vsel %vm555_vm0, %v486_v46, 0  ;;  %v2572_v58 = vld [vmem:[%s4012_s1 + $0x5c] sm:$0xf]  ;;  %v2955_v4 = vld [vmem:[%s2880_s29 + $0x20] sm:$0xff] }
  0x20   : > { %v572_v52 = vsel %vm555_vm0, %v487_v47, 0  ;;  %v2410_v60 = vld [vmem:[%s4012_s1 + $0x78] sm:$0xf0]  ;;  %v2575_v62 = vld [vmem:[%s4012_s1 + $0x6c] sm:$0xf0]  ;;  %v2550_v5 = vld [vmem:[%s2880_s29 + $0x28] sm:$0xff]  ;;  %p2667_p3 = por %p2666_p2, %p2665_p1 }
  0x21   : > { %v2413_v63 = vor.u32 %v2572_v58, %v2410_v60  ;;  %v2401_v0 = vor.u32 %v2575_v62, %v2400_v61  ;;  %v2402_v2 = vld [vmem:[%s4012_s1 + $0x70] sm:$0xf0]  ;;  %v2552_v7 = vld [vmem:[%s2880_s29 + $0x38] sm:$0xff]  ;;  %v2553_v8 = vld [vmem:[%s2880_s29 + $0x40] sm:$0xff]  ;;  %v2996_v22 = vperm.slane %v308_v9, 2  ;;  %v2998_v23 = vperm.slane %v308_v9, 3 }
  0x22   : > { %587 = vmatpush.bf16.msra.mxu0 %v2353_v40  ;;  %676 = vmatpush.bf16.msra.mxu1 %v2357_v41  ;;  %v2405_v3 = vor.u32 %v2571_v1, %v2402_v2  ;;  %v2551_v6 = vld [vmem:[%s2880_s29 + $0x30] sm:$0xff]  ;;  %v2554_v34 = vld [vmem:[%s2880_s29 + $0x48] sm:$0xff]  ;;  %vm1868_vm2 = vcmask 1040384   ;;  %vm1870_vm3 = vcmask 1042434   ;;  %vm1873_vm4 = vcmask 1044484   ;;  %p2668_p5 = pnand %p2667_p3, %p2663_p0 }
  0x23   : > { %765 = vmatpush.bf16.msra.mxu2 %v2361_v44  ;;  %854 = vmatpush.bf16.msra.mxu3 %v2365_v45  ;;  %v2368_v60 = vld [vmem:[%s4012_s1 + $0x10] sm:$0xf]  ;;  %v2370_v1 = vld [vmem:[%s4012_s1 + $0x30] sm:$0xf0]  ;;  %vm1875_vm5 = vcmask 1046534   ;;  %vm1877_vm6 = vcmask 1045508  }
  0x24   : > { %v2567_v61 = vld [vmem:[%s4012_s1 + $0x2c] sm:$0xf0]  ;;  %vm1879_vm7 = vcmask 1043456   ;;  %vm2195_vm8 = vcmask 155648  }
  0x25   : > { %2414 = vmatmul.msk.bf16.vlgmr.msra.gmra.mxu0 %vm506_vm1, %v2883_v48  ;;  %2430 = vmatmul.msk.bf16.vlgmr.msra.gmra.mxu1 %vm506_vm1, %v2883_v48 }
  0x26   : > { %2446 = vmatmul.msk.bf16.vlgmr.msra.gmra.mxu2 %vm506_vm1, %v2883_v48  ;;  %2462 = vmatmul.msk.bf16.vlgmr.msra.gmra.mxu3 %vm506_vm1, %v2883_v48 }
  0x27   : > { %1119 = vmatpush.bf16.msrb.mxu2 %v575_v49  ;;  %1208 = vmatpush.bf16.msrb.mxu3 %v578_v50  ;;  %v2376_v50 = vld [vmem:[%s4012_s1 + $0x18] sm:$0xf] }
  0x28   : > { %941 = vmatpush.bf16.msrb.mxu0 %v569_v51  ;;  %1030 = vmatpush.bf16.msrb.mxu1 %v572_v52  ;;  %v2568_v51 = vld [vmem:[%s4012_s1 + $0x34] sm:$0xf0]  ;;  %v2564_v52 = vld [vmem:[%s4012_s1 + $0x1c] sm:$0xf] }
  0x29   : > { %v2377_v58 = vor.u32 %v2568_v51, %v2376_v50 }
  0x2b   : > { %1120 = vmatpush.bf16.msrb.mxu2 %v2409_v59  ;;  %1209 = vmatpush.bf16.msrb.mxu3 %v2413_v63  ;;  %v2378_v59 = vld [vmem:[%s4012_s1 + $0x38] sm:$0xf0]  ;;  %v2369_v63 = vor.u32 %v2567_v61, %v2368_v60 }
  0x2c   : > { %942 = vmatpush.bf16.msrb.mxu0 %v2401_v0  ;;  %1031 = vmatpush.bf16.msrb.mxu1 %v2405_v3  ;;  %v2381_v62 = vor.u32 %v2564_v52, %v2378_v59  ;;  %v2563_v0 = vld [vmem:[%s4012_s1 + $0x14] sm:$0xf] }
  0x2f   : > { %1121 = vmatpush.bf16.msrb.mxu2 %v2377_v58  ;;  %1210 = vmatpush.bf16.msrb.mxu3 %v2381_v62 }
  0x30   : > { %943 = vmatpush.bf16.msrb.mxu0 %v2369_v63  ;;  %v2556_v63 = vld [vmem:[%s2880_s29 + $0x58] sm:$0xff] }
  0x35   : > { %2415 = vmatmul.msk.bf16.gmra.mxu0 %vm506_vm1, %v2898_v53  ;;  %2431 = vmatmul.msk.bf16.gmra.mxu1 %vm506_vm1, %v2898_v53 }
  0x36   : > { %2447 = vmatmul.msk.bf16.gmra.mxu2 %vm506_vm1, %v2898_v53  ;;  %2463 = vmatmul.msk.bf16.gmra.mxu3 %vm506_vm1, %v2898_v53 }
  0x45   : > { %2416 = vmatmul.msk.bf16.gmra.mxu0 %vm506_vm1, %v2909_v54  ;;  %2432 = vmatmul.msk.bf16.gmra.mxu1 %vm506_vm1, %v2909_v54 }
  0x46   : > { %2448 = vmatmul.msk.bf16.gmra.mxu2 %vm506_vm1, %v2909_v54  ;;  %2464 = vmatmul.msk.bf16.gmra.mxu3 %vm506_vm1, %v2909_v54 }
  0x55   : > { %2417 = vmatmul.msk.bf16.gmra.mxu0 %vm506_vm1, %v2920_v55  ;;  %2433 = vmatmul.msk.bf16.gmra.mxu1 %vm506_vm1, %v2920_v55 }
  0x56   : > { %2449 = vmatmul.msk.bf16.gmra.mxu2 %vm506_vm1, %v2920_v55  ;;  %2465 = vmatmul.msk.bf16.gmra.mxu3 %vm506_vm1, %v2920_v55 }
  0x65   : > { %2418 = vmatmul.msk.bf16.gmra.mxu0 %vm506_vm1, %v2955_v4  ;;  %2434 = vmatmul.msk.bf16.gmra.mxu1 %vm506_vm1, %v2955_v4 }
  0x66   : > { %2450 = vmatmul.msk.bf16.gmra.mxu2 %vm506_vm1, %v2955_v4  ;;  %2466 = vmatmul.msk.bf16.gmra.mxu3 %vm506_vm1, %v2955_v4 }
  0x75   : > { %2419 = vmatmul.msk.bf16.gmra.mxu0 %vm506_vm1, %v2550_v5  ;;  %2435 = vmatmul.msk.bf16.gmra.mxu1 %vm506_vm1, %v2550_v5 }
  0x76   : > { %2451 = vmatmul.msk.bf16.gmra.mxu2 %vm506_vm1, %v2550_v5  ;;  %2467 = vmatmul.msk.bf16.gmra.mxu3 %vm506_vm1, %v2550_v5  ;;  %v2373_v5 = vor.u32 %v2563_v0, %v2370_v1 }
  0x78   : > { %1032 = vmatpush.bf16.msrb.mxu1 %v2373_v5 }
  0x85   : > { %2420 = vmatmul.msk.bf16.gmra.mxu0 %vm506_vm1, %v2551_v6  ;;  %2436 = vmatmul.msk.bf16.gmra.mxu1 %vm506_vm1, %v2551_v6 }
  0x86   : > { %2452 = vmatmul.msk.bf16.gmra.mxu2 %vm506_vm1, %v2551_v6  ;;  %2468 = vmatmul.msk.bf16.gmra.mxu3 %vm506_vm1, %v2551_v6 }
  0x95   : > { %2421 = vmatmul.msk.bf16.gmra.mxu0 %vm506_vm1, %v2552_v7  ;;  %2437 = vmatmul.msk.bf16.gmra.mxu1 %vm506_vm1, %v2552_v7 }
  0x96   : > { %2453 = vmatmul.msk.bf16.gmra.mxu2 %vm506_vm1, %v2552_v7  ;;  %2469 = vmatmul.msk.bf16.gmra.mxu3 %vm506_vm1, %v2552_v7 }
  0xa2   : > { %v589_v10 = vpop.f32.mrf.mxu0  ;;  %v678_v11 = vpop.f32.mrf.mxu1 }
  0xa3   : > { %v590_v14 = vadd.f32 %v589_v10, %v2984_v12  ;;  %v679_v15 = vadd.f32 %v678_v11, %v2986_v13 }
  0xa5   : > { %2422 = vmatmul.msk.bf16.gmra.mxu0 %vm506_vm1, %v2553_v8  ;;  %2438 = vmatmul.msk.bf16.gmra.mxu1 %vm506_vm1, %v2553_v8  ;;  %v1292_v24 = vmax.f32 %v590_v14, 0.0  ;;  %v1293_v25 = vmax.f32 %v679_v15, 0.0 }
  0xa6   : > { %2454 = vmatmul.msk.bf16.gmra.mxu2 %vm506_vm1, %v2553_v8  ;;  %2470 = vmatmul.msk.bf16.gmra.mxu3 %vm506_vm1, %v2553_v8 }
  0xa9   : > { %v767_v16 = vpop.f32.mrf.mxu2  ;;  %v856_v17 = vpop.f32.mrf.mxu3 }
  0xaa   : > { %v591_v18 = vpop.f32.mrf.mxu0  ;;  %v680_v19 = vpop.f32.mrf.mxu1  ;;  %v768_v30 = vadd.f32 %v767_v16, %v2996_v22  ;;  %v857_v31 = vadd.f32 %v856_v17, %v2998_v23 }
  0xab   : > { %v592_v20 = vadd.f32 %v591_v18, %v2984_v12  ;;  %v681_v21 = vadd.f32 %v680_v19, %v2986_v13 }
  0xac   : > { %v1294_v41 = vmax.f32 %v768_v30, 0.0  ;;  %v1295_v42 = vmax.f32 %v857_v31, 0.0 }
  0xad   : > { %v1300_v26 = vmax.f32 %v592_v20, 0.0  ;;  %v1301_v27 = vmax.f32 %v681_v21, 0.0 }
  0xaf   : > { %v1548_v28 = vadd.f32 %v1300_v26, %v1292_v24  ;;  %v1585_v29 = vadd.f32 %v1301_v27, %v1293_v25  ;;  %v2555_v26 = vld [vmem:[%s2880_s29 + $0x50] sm:$0xff] }
  0xb1   : > { %v769_v32 = vpop.f32.mrf.mxu2  ;;  %v858_v33 = vpop.f32.mrf.mxu3 }
  0xb2   : > { %v770_v35 = vadd.f32 %v769_v32, %v2996_v22  ;;  %v859_v36 = vadd.f32 %v858_v33, %v2998_v23  ;;  %v594_v37 = vpop.f32.mrf.mxu0  ;;  %v683_v38 = vpop.f32.mrf.mxu1 }
  0xb3   : > { %v595_v39 = vadd.f32 %v594_v37, %v2984_v12  ;;  %v684_v40 = vadd.f32 %v683_v38, %v2986_v13 }
  0xb4   : > { %v1302_v43 = vmax.f32 %v770_v35, 0.0  ;;  %v1303_v44 = vmax.f32 %v859_v36, 0.0 }
  0xb5   : > { %v1308_v45 = vmax.f32 %v595_v39, 0.0  ;;  %v1309_v46 = vmax.f32 %v684_v40, 0.0  ;;  %2423 = vmatmul.msk.bf16.gmra.mxu0 %vm506_vm1, %v2554_v34  ;;  %2439 = vmatmul.msk.bf16.gmra.mxu1 %vm506_vm1, %v2554_v34 }
  0xb6   : > { %v1622_v47 = vadd.f32 %v1302_v43, %v1294_v41  ;;  %v1659_v49 = vadd.f32 %v1303_v44, %v1295_v42  ;;  %2455 = vmatmul.msk.bf16.gmra.mxu2 %vm506_vm1, %v2554_v34  ;;  %2471 = vmatmul.msk.bf16.gmra.mxu3 %vm506_vm1, %v2554_v34 }
  0xb7   : > { %v1549_v56 = vadd.f32 %v1548_v28, %v1308_v45  ;;  %v1586_v57 = vadd.f32 %v1585_v29, %v1309_v46 }
  0xb9   : > { %v772_v2 = vpop.f32.mrf.mxu2  ;;  %v861_v3 = vpop.f32.mrf.mxu3 }
  0xba   : > { %v773_v6 = vadd.f32 %v772_v2, %v2996_v22  ;;  %v862_v7 = vadd.f32 %v861_v3, %v2998_v23  ;;  %v596_v8 = vpop.f32.mrf.mxu0  ;;  %v685_v9 = vpop.f32.mrf.mxu1 }
  0xbb   : > { %v597_v10 = vadd.f32 %v596_v8, %v2984_v12  ;;  %v686_v11 = vadd.f32 %v685_v9, %v2986_v13 }
  0xbc   : > { %v1310_v14 = vmax.f32 %v773_v6, 0.0  ;;  %v1311_v15 = vmax.f32 %v862_v7, 0.0 }
  0xbd   : > { %v1316_v16 = vmax.f32 %v597_v10, 0.0  ;;  %v1317_v17 = vmax.f32 %v686_v11, 0.0 }
  0xbe   : > { %v1623_v18 = vadd.f32 %v1622_v47, %v1310_v14  ;;  %v1660_v19 = vadd.f32 %v1659_v49, %v1311_v15 }
  0xbf   : > { %v1550_v20 = vadd.f32 %v1549_v56, %v1316_v16  ;;  %v1587_v21 = vadd.f32 %v1586_v57, %v1317_v17 }
  0xc1   : > { %v774_v24 = vpop.f32.mrf.mxu2  ;;  %v863_v25 = vpop.f32.mrf.mxu3 }
  0xc2   : > { %v775_v27 = vadd.f32 %v774_v24, %v2996_v22  ;;  %v864_v28 = vadd.f32 %v863_v25, %v2998_v23  ;;  %v599_v29 = vpop.f32.mrf.mxu0  ;;  %v688_v30 = vpop.f32.mrf.mxu1 }
  0xc3   : > { %v600_v31 = vadd.f32 %v599_v29, %v2984_v12  ;;  %v689_v32 = vadd.f32 %v688_v30, %v2986_v13 }
  0xc4   : > { %v1318_v33 = vmax.f32 %v775_v27, 0.0  ;;  %v1319_v34 = vmax.f32 %v864_v28, 0.0 }
  0xc5   : > { %v1324_v35 = vmax.f32 %v600_v31, 0.0  ;;  %v1325_v36 = vmax.f32 %v689_v32, 0.0  ;;  %2424 = vmatmul.msk.bf16.gmra.mxu0 %vm506_vm1, %v2555_v26  ;;  %2440 = vmatmul.msk.bf16.gmra.mxu1 %vm506_vm1, %v2555_v26 }
  0xc6   : > { %v1624_v37 = vadd.f32 %v1623_v18, %v1318_v33  ;;  %v1661_v38 = vadd.f32 %v1660_v19, %v1319_v34  ;;  %2456 = vmatmul.msk.bf16.gmra.mxu2 %vm506_vm1, %v2555_v26  ;;  %2472 = vmatmul.msk.bf16.gmra.mxu3 %vm506_vm1, %v2555_v26 }
  0xc7   : > { %v1551_v39 = vadd.f32 %v1550_v20, %v1324_v35  ;;  %v1588_v40 = vadd.f32 %v1587_v21, %v1325_v36 }
  0xc9   : > { %v777_v41 = vpop.f32.mrf.mxu2  ;;  %v866_v42 = vpop.f32.mrf.mxu3 }
  0xca   : > { %v778_v43 = vadd.f32 %v777_v41, %v2996_v22  ;;  %v867_v44 = vadd.f32 %v866_v42, %v2998_v23  ;;  %v601_v45 = vpop.f32.mrf.mxu0  ;;  %v690_v46 = vpop.f32.mrf.mxu1 }
  0xcb   : > { %v602_v47 = vadd.f32 %v601_v45, %v2984_v12  ;;  %v691_v49 = vadd.f32 %v690_v46, %v2986_v13 }
  0xcc   : > { %v1326_v50 = vmax.f32 %v778_v43, 0.0  ;;  %v1327_v51 = vmax.f32 %v867_v44, 0.0 }
  0xcd   : > { %v1332_v52 = vmax.f32 %v602_v47, 0.0  ;;  %v1333_v56 = vmax.f32 %v691_v49, 0.0 }
  0xce   : > { %v1625_v57 = vadd.f32 %v1624_v37, %v1326_v50  ;;  %v1662_v58 = vadd.f32 %v1661_v38, %v1327_v51  ;;  %v2557_v37 = vld [vmem:[%s2880_s29 + $0x60] sm:$0xff] }
  0xcf   : > { %v1552_v59 = vadd.f32 %v1551_v39, %v1332_v52  ;;  %v1589_v60 = vadd.f32 %v1588_v40, %v1333_v56 }
  0xd1   : > { %v779_v61 = vpop.f32.mrf.mxu2  ;;  %v868_v62 = vpop.f32.mrf.mxu3 }
  0xd2   : > { %v780_v0 = vadd.f32 %v779_v61, %v2996_v22  ;;  %v869_v1 = vadd.f32 %v868_v62, %v2998_v23  ;;  %v604_v2 = vpop.f32.mrf.mxu0  ;;  %v693_v3 = vpop.f32.mrf.mxu1 }
  0xd3   : > { %v605_v5 = vadd.f32 %v604_v2, %v2984_v12  ;;  %v694_v6 = vadd.f32 %v693_v3, %v2986_v13 }
  0xd4   : > { %v1334_v7 = vmax.f32 %v780_v0, 0.0  ;;  %v1335_v8 = vmax.f32 %v869_v1, 0.0 }
  0xd5   : > { %v1340_v9 = vmax.f32 %v605_v5, 0.0  ;;  %v1341_v10 = vmax.f32 %v694_v6, 0.0  ;;  %2425 = vmatmul.msk.bf16.gmra.mxu0 %vm506_vm1, %v2556_v63  ;;  %2441 = vmatmul.msk.bf16.gmra.mxu1 %vm506_vm1, %v2556_v63 }
  0xd6   : > { %v1626_v11 = vadd.f32 %v1625_v57, %v1334_v7  ;;  %v1663_v14 = vadd.f32 %v1662_v58, %v1335_v8  ;;  %2457 = vmatmul.msk.bf16.gmra.mxu2 %vm506_vm1, %v2556_v63  ;;  %2473 = vmatmul.msk.bf16.gmra.mxu3 %vm506_vm1, %v2556_v63 }
  0xd7   : > { %v1553_v15 = vadd.f32 %v1552_v59, %v1340_v9  ;;  %v1590_v16 = vadd.f32 %v1589_v60, %v1341_v10 }
  0xd9   : > { %v782_v17 = vpop.f32.mrf.mxu2  ;;  %v871_v18 = vpop.f32.mrf.mxu3 }
  0xda   : > { %v783_v19 = vadd.f32 %v782_v17, %v2996_v22  ;;  %v872_v20 = vadd.f32 %v871_v18, %v2998_v23  ;;  %v606_v21 = vpop.f32.mrf.mxu0  ;;  %v695_v24 = vpop.f32.mrf.mxu1 }
  0xdb   : > { %v607_v25 = vadd.f32 %v606_v21, %v2984_v12  ;;  %v696_v26 = vadd.f32 %v695_v24, %v2986_v13 }
  0xdc   : > { %v1342_v27 = vmax.f32 %v783_v19, 0.0  ;;  %v1343_v28 = vmax.f32 %v872_v20, 0.0 }
  0xdd   : > { %v1348_v29 = vmax.f32 %v607_v25, 0.0  ;;  %v1349_v30 = vmax.f32 %v696_v26, 0.0 }
  0xde   : > { %v1627_v31 = vadd.f32 %v1626_v11, %v1342_v27  ;;  %v1664_v32 = vadd.f32 %v1663_v14, %v1343_v28  ;;  %v2558_v11 = vld [vmem:[%s2880_s29 + $0x68] sm:$0xff] }
  0xdf   : > { %v1554_v33 = vadd.f32 %v1553_v15, %v1348_v29  ;;  %v1591_v34 = vadd.f32 %v1590_v16, %v1349_v30 }
  0xe1   : > { %v784_v35 = vpop.f32.mrf.mxu2  ;;  %v873_v36 = vpop.f32.mrf.mxu3 }
  0xe2   : > { %v785_v38 = vadd.f32 %v784_v35, %v2996_v22  ;;  %v874_v39 = vadd.f32 %v873_v36, %v2998_v23  ;;  %v609_v40 = vpop.f32.mrf.mxu0  ;;  %v698_v41 = vpop.f32.mrf.mxu1 }
  0xe3   : > { %v610_v42 = vadd.f32 %v609_v40, %v2984_v12  ;;  %v699_v43 = vadd.f32 %v698_v41, %v2986_v13 }
  0xe4   : > { %v1350_v44 = vmax.f32 %v785_v38, 0.0  ;;  %v1351_v45 = vmax.f32 %v874_v39, 0.0 }
  0xe5   : > { %v1356_v46 = vmax.f32 %v610_v42, 0.0  ;;  %v1357_v47 = vmax.f32 %v699_v43, 0.0  ;;  %2426 = vmatmul.msk.bf16.gmra.mxu0 %vm506_vm1, %v2557_v37  ;;  %2442 = vmatmul.msk.bf16.gmra.mxu1 %vm506_vm1, %v2557_v37 }
  0xe6   : > { %v1628_v49 = vadd.f32 %v1627_v31, %v1350_v44  ;;  %v1665_v50 = vadd.f32 %v1664_v32, %v1351_v45  ;;  %2458 = vmatmul.msk.bf16.gmra.mxu2 %vm506_vm1, %v2557_v37  ;;  %2474 = vmatmul.msk.bf16.gmra.mxu3 %vm506_vm1, %v2557_v37 }
  0xe7   : > { %v1555_v51 = vadd.f32 %v1554_v33, %v1356_v46  ;;  %v1592_v52 = vadd.f32 %v1591_v34, %v1357_v47 }
  0xe9   : > { %v787_v56 = vpop.f32.mrf.mxu2  ;;  %v876_v57 = vpop.f32.mrf.mxu3 }
  0xea   : > { %v788_v58 = vadd.f32 %v787_v56, %v2996_v22  ;;  %v877_v59 = vadd.f32 %v876_v57, %v2998_v23  ;;  %v611_v60 = vpop.f32.mrf.mxu0  ;;  %v700_v61 = vpop.f32.mrf.mxu1 }
  0xeb   : > { %v612_v62 = vadd.f32 %v611_v60, %v2984_v12  ;;  %v701_v63 = vadd.f32 %v700_v61, %v2986_v13 }
  0xec   : > { %v1358_v0 = vmax.f32 %v788_v58, 0.0  ;;  %v1359_v1 = vmax.f32 %v877_v59, 0.0 }
  0xed   : > { %v1364_v2 = vmax.f32 %v612_v62, 0.0  ;;  %v1365_v3 = vmax.f32 %v701_v63, 0.0 }
  0xee   : > { %v1629_v5 = vadd.f32 %v1628_v49, %v1358_v0  ;;  %v1666_v6 = vadd.f32 %v1665_v50, %v1359_v1  ;;  %v2559_v49 = vld [vmem:[%s2880_s29 + $0x70] sm:$0xff] }
  0xef   : > { %v1556_v7 = vadd.f32 %v1555_v51, %v1364_v2  ;;  %v1593_v8 = vadd.f32 %v1592_v52, %v1365_v3 }
  0xf1   : > { %v789_v9 = vpop.f32.mrf.mxu2  ;;  %v878_v10 = vpop.f32.mrf.mxu3 }
  0xf2   : > { %v790_v14 = vadd.f32 %v789_v9, %v2996_v22  ;;  %v879_v15 = vadd.f32 %v878_v10, %v2998_v23  ;;  %v614_v16 = vpop.f32.mrf.mxu0  ;;  %v703_v17 = vpop.f32.mrf.mxu1 }
  0xf3   : > { %v615_v18 = vadd.f32 %v614_v16, %v2984_v12  ;;  %v704_v19 = vadd.f32 %v703_v17, %v2986_v13 }
  0xf4   : > { %v1366_v20 = vmax.f32 %v790_v14, 0.0  ;;  %v1367_v21 = vmax.f32 %v879_v15, 0.0 }
  0xf5   : > { %v1372_v24 = vmax.f32 %v615_v18, 0.0  ;;  %v1373_v25 = vmax.f32 %v704_v19, 0.0  ;;  %2427 = vmatmul.msk.bf16.gmra.mxu0 %vm506_vm1, %v2558_v11  ;;  %2443 = vmatmul.msk.bf16.gmra.mxu1 %vm506_vm1, %v2558_v11 }
  0xf6   : > { %v1630_v26 = vadd.f32 %v1629_v5, %v1366_v20  ;;  %v1667_v27 = vadd.f32 %v1666_v6, %v1367_v21  ;;  %2459 = vmatmul.msk.bf16.gmra.mxu2 %vm506_vm1, %v2558_v11  ;;  %2475 = vmatmul.msk.bf16.gmra.mxu3 %vm506_vm1, %v2558_v11 }
  0xf7   : > { %v1557_v28 = vadd.f32 %v1556_v7, %v1372_v24  ;;  %v1594_v29 = vadd.f32 %v1593_v8, %v1373_v25 }
  0xf9   : > { %v792_v30 = vpop.f32.mrf.mxu2  ;;  %v881_v31 = vpop.f32.mrf.mxu3 }
  0xfa   : > { %v793_v32 = vadd.f32 %v792_v30, %v2996_v22  ;;  %v882_v33 = vadd.f32 %v881_v31, %v2998_v23  ;;  %v616_v34 = vpop.f32.mrf.mxu0  ;;  %v705_v35 = vpop.f32.mrf.mxu1 }
  0xfb   : > { %v617_v36 = vadd.f32 %v616_v34, %v2984_v12  ;;  %v706_v37 = vadd.f32 %v705_v35, %v2986_v13 }
  0xfc   : > { %v1374_v38 = vmax.f32 %v793_v32, 0.0  ;;  %v1375_v39 = vmax.f32 %v882_v33, 0.0 }
  0xfd   : > { %v1380_v40 = vmax.f32 %v617_v36, 0.0  ;;  %v1381_v41 = vmax.f32 %v706_v37, 0.0 }
  0xfe   : > { %v1631_v42 = vadd.f32 %v1630_v26, %v1374_v38  ;;  %v1668_v43 = vadd.f32 %v1667_v27, %v1375_v39  ;;  %v2560_v26 = vld [vmem:[%s2880_s29 + $0x78] sm:$0xff] }
  0xff   : > { %v1558_v44 = vadd.f32 %v1557_v28, %v1380_v40  ;;  %v1595_v45 = vadd.f32 %v1594_v29, %v1381_v41 }
 0x101   : > { %v794_v46 = vpop.f32.mrf.mxu2  ;;  %v883_v47 = vpop.f32.mrf.mxu3 }
 0x102   : > { %v795_v50 = vadd.f32 %v794_v46, %v2996_v22  ;;  %v884_v51 = vadd.f32 %v883_v47, %v2998_v23  ;;  %v619_v52 = vpop.f32.mrf.mxu0  ;;  %v708_v56 = vpop.f32.mrf.mxu1 }
 0x103   : > { %v620_v57 = vadd.f32 %v619_v52, %v2984_v12  ;;  %v709_v58 = vadd.f32 %v708_v56, %v2986_v13 }
 0x104   : > { %v1382_v59 = vmax.f32 %v795_v50, 0.0  ;;  %v1383_v60 = vmax.f32 %v884_v51, 0.0 }
 0x105   : > { %v1388_v61 = vmax.f32 %v620_v57, 0.0  ;;  %v1389_v62 = vmax.f32 %v709_v58, 0.0  ;;  %2428 = vmatmul.msk.bf16.gmra.mxu0 %vm506_vm1, %v2559_v49  ;;  %2444 = vmatmul.msk.bf16.gmra.mxu1 %vm506_vm1, %v2559_v49 }
 0x106   : > { %v1632_v63 = vadd.f32 %v1631_v42, %v1382_v59  ;;  %v1669_v0 = vadd.f32 %v1668_v43, %v1383_v60  ;;  %2460 = vmatmul.msk.bf16.gmra.mxu2 %vm506_vm1, %v2559_v49  ;;  %2476 = vmatmul.msk.bf16.gmra.mxu3 %vm506_vm1, %v2559_v49 }
 0x107   : > { %v1559_v1 = vadd.f32 %v1558_v44, %v1388_v61  ;;  %v1596_v2 = vadd.f32 %v1595_v45, %v1389_v62 }
 0x109   : > { %v797_v3 = vpop.f32.mrf.mxu2  ;;  %v886_v5 = vpop.f32.mrf.mxu3 }
 0x10a   : > { %v798_v6 = vadd.f32 %v797_v3, %v2996_v22  ;;  %v887_v7 = vadd.f32 %v886_v5, %v2998_v23  ;;  %v621_v8 = vpop.f32.mrf.mxu0  ;;  %v710_v9 = vpop.f32.mrf.mxu1 }
 0x10b   : > { %v622_v10 = vadd.f32 %v621_v8, %v2984_v12  ;;  %v711_v11 = vadd.f32 %v710_v9, %v2986_v13 }
 0x10c   : > { %v1390_v14 = vmax.f32 %v798_v6, 0.0  ;;  %v1391_v15 = vmax.f32 %v887_v7, 0.0 }
 0x10d   : > { %v1396_v16 = vmax.f32 %v622_v10, 0.0  ;;  %v1397_v17 = vmax.f32 %v711_v11, 0.0 }
 0x10e   : > { %v1633_v18 = vadd.f32 %v1632_v63, %v1390_v14  ;;  %v1670_v19 = vadd.f32 %v1669_v0, %v1391_v15 }
 0x10f   : > { %v1560_v20 = vadd.f32 %v1559_v1, %v1396_v16  ;;  %v1597_v21 = vadd.f32 %v1596_v2, %v1397_v17 }
 0x111   : > { %v799_v24 = vpop.f32.mrf.mxu2  ;;  %v888_v25 = vpop.f32.mrf.mxu3 }
 0x112   : > { %v800_v27 = vadd.f32 %v799_v24, %v2996_v22  ;;  %v889_v28 = vadd.f32 %v888_v25, %v2998_v23  ;;  %v624_v29 = vpop.f32.mrf.mxu0  ;;  %v713_v30 = vpop.f32.mrf.mxu1 }
 0x113   : > { %v625_v31 = vadd.f32 %v624_v29, %v2984_v12  ;;  %v714_v32 = vadd.f32 %v713_v30, %v2986_v13 }
 0x114   : > { %v1398_v33 = vmax.f32 %v800_v27, 0.0  ;;  %v1399_v34 = vmax.f32 %v889_v28, 0.0 }
 0x115   : > { %v1404_v35 = vmax.f32 %v625_v31, 0.0  ;;  %v1405_v36 = vmax.f32 %v714_v32, 0.0  ;;  %2429 = vmatmul.msk.bf16.gmra.mxu0 %vm506_vm1, %v2560_v26  ;;  %2445 = vmatmul.msk.bf16.gmra.mxu1 %vm506_vm1, %v2560_v26 }
 0x116   : > { %v1634_v37 = vadd.f32 %v1633_v18, %v1398_v33  ;;  %v1671_v38 = vadd.f32 %v1670_v19, %v1399_v34  ;;  %2461 = vmatmul.msk.bf16.gmra.mxu2 %vm506_vm1, %v2560_v26  ;;  %2477 = vmatmul.msk.bf16.gmra.mxu3 %vm506_vm1, %v2560_v26 }
 0x117   : > { %v1561_v39 = vadd.f32 %v1560_v20, %v1404_v35  ;;  %v1598_v40 = vadd.f32 %v1597_v21, %v1405_v36 }
 0x119   : > { %v802_v41 = vpop.f32.mrf.mxu2  ;;  %v891_v42 = vpop.f32.mrf.mxu3 }
 0x11a   : > { %v803_v43 = vadd.f32 %v802_v41, %v2996_v22  ;;  %v892_v44 = vadd.f32 %v891_v42, %v2998_v23  ;;  %v626_v45 = vpop.f32.mrf.mxu0  ;;  %v715_v46 = vpop.f32.mrf.mxu1 }
 0x11b   : > { %v627_v47 = vadd.f32 %v626_v45, %v2984_v12  ;;  %v716_v49 = vadd.f32 %v715_v46, %v2986_v13 }
 0x11c   : > { %v1406_v50 = vmax.f32 %v803_v43, 0.0  ;;  %v1407_v51 = vmax.f32 %v892_v44, 0.0 }
 0x11d   : > { %v1412_v52 = vmax.f32 %v627_v47, 0.0  ;;  %v1413_v56 = vmax.f32 %v716_v49, 0.0 }
 0x11e   : > { %v1635_v57 = vadd.f32 %v1634_v37, %v1406_v50  ;;  %v1672_v58 = vadd.f32 %v1671_v38, %v1407_v51 }
 0x11f   : > { %v1562_v59 = vadd.f32 %v1561_v39, %v1412_v52  ;;  %v1599_v60 = vadd.f32 %v1598_v40, %v1413_v56 }
 0x121   : > { %v804_v61 = vpop.f32.mrf.mxu2  ;;  %v893_v62 = vpop.f32.mrf.mxu3 }
 0x122   : > { %v805_v63 = vadd.f32 %v804_v61, %v2996_v22  ;;  %v894_v0 = vadd.f32 %v893_v62, %v2998_v23  ;;  %v629_v1 = vpop.f32.mrf.mxu0  ;;  %v718_v2 = vpop.f32.mrf.mxu1 }
 0x123   : > { %v630_v3 = vadd.f32 %v629_v1, %v2984_v12  ;;  %v719_v5 = vadd.f32 %v718_v2, %v2986_v13 }
 0x124   : > { %v1414_v6 = vmax.f32 %v805_v63, 0.0  ;;  %v1415_v7 = vmax.f32 %v894_v0, 0.0 }
 0x125   : > { %v1420_v8 = vmax.f32 %v630_v3, 0.0  ;;  %v1421_v9 = vmax.f32 %v719_v5, 0.0  ;;  %2478 = vmatmul.msk.bf16.vlgmr.msrb.gmra.mxu0 %vm506_vm1, %v2883_v48  ;;  %2494 = vmatmul.msk.bf16.vlgmr.msrb.gmra.mxu1 %vm506_vm1, %v2883_v48 }
 0x126   : > { %v1636_v10 = vadd.f32 %v1635_v57, %v1414_v6  ;;  %v1673_v11 = vadd.f32 %v1672_v58, %v1415_v7  ;;  %2510 = vmatmul.msk.bf16.vlgmr.msrb.gmra.mxu2 %vm506_vm1, %v2883_v48  ;;  %2526 = vmatmul.msk.bf16.vlgmr.msrb.gmra.mxu3 %vm506_vm1, %v2883_v48 }
 0x127   : > { %v1563_v14 = vadd.f32 %v1562_v59, %v1420_v8  ;;  %v1600_v15 = vadd.f32 %v1599_v60, %v1421_v9 }
 0x129   : > { %v807_v16 = vpop.f32.mrf.mxu2  ;;  %v896_v17 = vpop.f32.mrf.mxu3 }
 0x12a   : > { %v808_v18 = vadd.f32 %v807_v16, %v2996_v22  ;;  %v897_v19 = vadd.f32 %v896_v17, %v2998_v23  ;;  %v631_v20 = vpop.f32.mrf.mxu0  ;;  %v720_v21 = vpop.f32.mrf.mxu1 }
 0x12b   : > { %v632_v24 = vadd.f32 %v631_v20, %v2984_v12  ;;  %v721_v25 = vadd.f32 %v720_v21, %v2986_v13 }
 0x12c   : > { %v1422_v26 = vmax.f32 %v808_v18, 0.0  ;;  %v1423_v27 = vmax.f32 %v897_v19, 0.0 }
 0x12d   : > { %v1428_v28 = vmax.f32 %v632_v24, 0.0  ;;  %v1429_v29 = vmax.f32 %v721_v25, 0.0 }
 0x12e   : > { %v1637_v30 = vadd.f32 %v1636_v10, %v1422_v26  ;;  %v1674_v48 = vadd.f32 %v1673_v11, %v1423_v27 }
 0x12f   : > { %v1564_v31 = vadd.f32 %v1563_v14, %v1428_v28  ;;  %v1601_v32 = vadd.f32 %v1600_v15, %v1429_v29 }
 0x131   : > { %v809_v33 = vpop.f32.mrf.mxu2  ;;  %v898_v34 = vpop.f32.mrf.mxu3 }
 0x132   : > { %v810_v35 = vadd.f32 %v809_v33, %v2996_v22  ;;  %v899_v36 = vadd.f32 %v898_v34, %v2998_v23  ;;  %v634_v37 = vpop.f32.mrf.mxu0  ;;  %v723_v38 = vpop.f32.mrf.mxu1 }
 0x133   : > { %v635_v39 = vadd.f32 %v634_v37, %v2984_v12  ;;  %v724_v40 = vadd.f32 %v723_v38, %v2986_v13 }
 0x134   : > { %v1430_v41 = vmax.f32 %v810_v35, 0.0  ;;  %v1431_v42 = vmax.f32 %v899_v36, 0.0 }
 0x135   : > { %v1436_v43 = vmax.f32 %v635_v39, 0.0  ;;  %v1437_v44 = vmax.f32 %v724_v40, 0.0  ;;  %2479 = vmatmul.msk.bf16.gmra.mxu0 %vm506_vm1, %v2898_v53  ;;  %2495 = vmatmul.msk.bf16.gmra.mxu1 %vm506_vm1, %v2898_v53 }
 0x136   : > { %v1638_v45 = vadd.f32 %v1637_v30, %v1430_v41  ;;  %v1675_v46 = vadd.f32 %v1674_v48, %v1431_v42  ;;  %2511 = vmatmul.msk.bf16.gmra.mxu2 %vm506_vm1, %v2898_v53  ;;  %2527 = vmatmul.msk.bf16.gmra.mxu3 %vm506_vm1, %v2898_v53 }
 0x137   : > { %v1565_v47 = vadd.f32 %v1564_v31, %v1436_v43  ;;  %v1602_v49 = vadd.f32 %v1601_v32, %v1437_v44 }
 0x139   : > { %v812_v50 = vpop.f32.mrf.mxu2  ;;  %v901_v51 = vpop.f32.mrf.mxu3 }
 0x13a   : > { %v813_v52 = vadd.f32 %v812_v50, %v2996_v22  ;;  %v902_v56 = vadd.f32 %v901_v51, %v2998_v23  ;;  %v636_v57 = vpop.f32.mrf.mxu0  ;;  %v725_v58 = vpop.f32.mrf.mxu1 }
 0x13b   : > { %v637_v59 = vadd.f32 %v636_v57, %v2984_v12  ;;  %v726_v60 = vadd.f32 %v725_v58, %v2986_v13 }
 0x13c   : > { %v1438_v61 = vmax.f32 %v813_v52, 0.0  ;;  %v1439_v62 = vmax.f32 %v902_v56, 0.0 }
 0x13d   : > { %v1444_v63 = vmax.f32 %v637_v59, 0.0  ;;  %v1445_v0 = vmax.f32 %v726_v60, 0.0 }
 0x13e   : > { %v1639_v1 = vadd.f32 %v1638_v45, %v1438_v61  ;;  %v1676_v53 = vadd.f32 %v1675_v46, %v1439_v62 }
 0x13f   : > { %v1566_v2 = vadd.f32 %v1565_v47, %v1444_v63  ;;  %v1603_v3 = vadd.f32 %v1602_v49, %v1445_v0 }
 0x141   : > { %v814_v5 = vpop.f32.mrf.mxu2  ;;  %v903_v6 = vpop.f32.mrf.mxu3 }
 0x142   : > { %v815_v7 = vadd.f32 %v814_v5, %v2996_v22  ;;  %v904_v8 = vadd.f32 %v903_v6, %v2998_v23  ;;  %v639_v9 = vpop.f32.mrf.mxu0  ;;  %v728_v10 = vpop.f32.mrf.mxu1 }
 0x143   : > { %v640_v11 = vadd.f32 %v639_v9, %v2984_v12  ;;  %v729_v14 = vadd.f32 %v728_v10, %v2986_v13 }
 0x144   : > { %v1446_v15 = vmax.f32 %v815_v7, 0.0  ;;  %v1447_v16 = vmax.f32 %v904_v8, 0.0 }
 0x145   : > { %v1452_v17 = vmax.f32 %v640_v11, 0.0  ;;  %v1453_v18 = vmax.f32 %v729_v14, 0.0  ;;  %2480 = vmatmul.msk.bf16.gmra.mxu0 %vm506_vm1, %v2909_v54  ;;  %2496 = vmatmul.msk.bf16.gmra.mxu1 %vm506_vm1, %v2909_v54 }
 0x146   : > { %v1640_v19 = vadd.f32 %v1639_v1, %v1446_v15  ;;  %v1677_v20 = vadd.f32 %v1676_v53, %v1447_v16  ;;  %2512 = vmatmul.msk.bf16.gmra.mxu2 %vm506_vm1, %v2909_v54  ;;  %2528 = vmatmul.msk.bf16.gmra.mxu3 %vm506_vm1, %v2909_v54 }
 0x147   : > { %v1567_v21 = vadd.f32 %v1566_v2, %v1452_v17  ;;  %v1604_v24 = vadd.f32 %v1603_v3, %v1453_v18 }
 0x149   : > { %v817_v25 = vpop.f32.mrf.mxu2  ;;  %v906_v26 = vpop.f32.mrf.mxu3 }
 0x14a   : > { %v818_v27 = vadd.f32 %v817_v25, %v2996_v22  ;;  %v907_v28 = vadd.f32 %v906_v26, %v2998_v23  ;;  %v641_v29 = vpop.f32.mrf.mxu0  ;;  %v730_v30 = vpop.f32.mrf.mxu1 }
 0x14b   : > { %v642_v48 = vadd.f32 %v641_v29, %v2984_v12  ;;  %v731_v31 = vadd.f32 %v730_v30, %v2986_v13 }
 0x14c   : > { %v1454_v32 = vmax.f32 %v818_v27, 0.0  ;;  %v1455_v33 = vmax.f32 %v907_v28, 0.0 }
 0x14d   : > { %v1460_v34 = vmax.f32 %v642_v48, 0.0  ;;  %v1461_v35 = vmax.f32 %v731_v31, 0.0 }
 0x14e   : > { %v1641_v36 = vadd.f32 %v1640_v19, %v1454_v32  ;;  %v1678_v54 = vadd.f32 %v1677_v20, %v1455_v33 }
 0x14f   : > { %v1568_v37 = vadd.f32 %v1567_v21, %v1460_v34  ;;  %v1605_v38 = vadd.f32 %v1604_v24, %v1461_v35 }
 0x151   : > { %v819_v39 = vpop.f32.mrf.mxu2  ;;  %v908_v40 = vpop.f32.mrf.mxu3 }
 0x152   : > { %v820_v41 = vadd.f32 %v819_v39, %v2996_v22  ;;  %v909_v42 = vadd.f32 %v908_v40, %v2998_v23  ;;  %v644_v43 = vpop.f32.mrf.mxu0  ;;  %v733_v44 = vpop.f32.mrf.mxu1 }
 0x153   : > { %v645_v45 = vadd.f32 %v644_v43, %v2984_v12  ;;  %v734_v46 = vadd.f32 %v733_v44, %v2986_v13 }
 0x154   : > { %v1462_v47 = vmax.f32 %v820_v41, 0.0  ;;  %v1463_v49 = vmax.f32 %v909_v42, 0.0 }
 0x155   : > { %v1468_v50 = vmax.f32 %v645_v45, 0.0  ;;  %v1469_v51 = vmax.f32 %v734_v46, 0.0  ;;  %2481 = vmatmul.msk.bf16.gmra.mxu0 %vm506_vm1, %v2920_v55  ;;  %2497 = vmatmul.msk.bf16.gmra.mxu1 %vm506_vm1, %v2920_v55 }
 0x156   : > { %v1642_v52 = vadd.f32 %v1641_v36, %v1462_v47  ;;  %v1679_v56 = vadd.f32 %v1678_v54, %v1463_v49  ;;  %2513 = vmatmul.msk.bf16.gmra.mxu2 %vm506_vm1, %v2920_v55  ;;  %2529 = vmatmul.msk.bf16.gmra.mxu3 %vm506_vm1, %v2920_v55 }
 0x157   : > { %v1569_v57 = vadd.f32 %v1568_v37, %v1468_v50  ;;  %v1606_v58 = vadd.f32 %v1605_v38, %v1469_v51 }
 0x159   : > { %v822_v59 = vpop.f32.mrf.mxu2  ;;  %v911_v60 = vpop.f32.mrf.mxu3 }
 0x15a   : > { %v823_v61 = vadd.f32 %v822_v59, %v2996_v22  ;;  %v912_v62 = vadd.f32 %v911_v60, %v2998_v23  ;;  %v646_v63 = vpop.f32.mrf.mxu0  ;;  %v735_v0 = vpop.f32.mrf.mxu1  ;;  %v2632_v59 = vld [vmem:[%s2880_s29 + $0x28] sm:$0xff] }
 0x15b   : > { %v647_v1 = vadd.f32 %v646_v63, %v2984_v12  ;;  %v736_v53 = vadd.f32 %v735_v0, %v2986_v13 }
 0x15c   : > { %v1470_v2 = vmax.f32 %v823_v61, 0.0  ;;  %v1471_v3 = vmax.f32 %v912_v62, 0.0 }
 0x15d   : > { %v1476_v5 = vmax.f32 %v647_v1, 0.0  ;;  %v1477_v6 = vmax.f32 %v736_v53, 0.0 }
 0x15e   : > { %v1643_v7 = vadd.f32 %v1642_v52, %v1470_v2  ;;  %v1680_v55 = vadd.f32 %v1679_v56, %v1471_v3 }
 0x15f   : > { %v1570_v8 = vadd.f32 %v1569_v57, %v1476_v5  ;;  %v1607_v9 = vadd.f32 %v1606_v58, %v1477_v6 }
 0x161   : > { %v824_v10 = vpop.f32.mrf.mxu2  ;;  %v913_v11 = vpop.f32.mrf.mxu3 }
 0x162   : > { %v825_v14 = vadd.f32 %v824_v10, %v2996_v22  ;;  %v914_v15 = vadd.f32 %v913_v11, %v2998_v23  ;;  %v649_v16 = vpop.f32.mrf.mxu0  ;;  %v738_v17 = vpop.f32.mrf.mxu1 }
 0x163   : > { %v650_v18 = vadd.f32 %v649_v16, %v2984_v12  ;;  %v739_v19 = vadd.f32 %v738_v17, %v2986_v13 }
 0x164   : > { %v1478_v20 = vmax.f32 %v825_v14, 0.0  ;;  %v1479_v21 = vmax.f32 %v914_v15, 0.0 }
 0x165   : > { %v1484_v24 = vmax.f32 %v650_v18, 0.0  ;;  %v1485_v25 = vmax.f32 %v739_v19, 0.0  ;;  %2482 = vmatmul.msk.bf16.gmra.mxu0 %vm506_vm1, %v2955_v4  ;;  %2498 = vmatmul.msk.bf16.gmra.mxu1 %vm506_vm1, %v2955_v4 }
 0x166   : > { %v1644_v26 = vadd.f32 %v1643_v7, %v1478_v20  ;;  %v1681_v27 = vadd.f32 %v1680_v55, %v1479_v21  ;;  %2514 = vmatmul.msk.bf16.gmra.mxu2 %vm506_vm1, %v2955_v4  ;;  %2530 = vmatmul.msk.bf16.gmra.mxu3 %vm506_vm1, %v2955_v4 }
 0x167   : > { %v1571_v28 = vadd.f32 %v1570_v8, %v1484_v24  ;;  %v1608_v29 = vadd.f32 %v1607_v9, %v1485_v25 }
 0x169   : > { %v827_v30 = vpop.f32.mrf.mxu2  ;;  %v916_v48 = vpop.f32.mrf.mxu3 }
 0x16a   : > { %v828_v31 = vadd.f32 %v827_v30, %v2996_v22  ;;  %v917_v32 = vadd.f32 %v916_v48, %v2998_v23  ;;  %v651_v33 = vpop.f32.mrf.mxu0  ;;  %v740_v34 = vpop.f32.mrf.mxu1  ;;  %v2633_v48 = vld [vmem:[%s2880_s29 + $0x30] sm:$0xff] }
 0x16b   : > { %v652_v35 = vadd.f32 %v651_v33, %v2984_v12  ;;  %v741_v36 = vadd.f32 %v740_v34, %v2986_v13 }
 0x16c   : > { %v1486_v54 = vmax.f32 %v828_v31, 0.0  ;;  %v1487_v37 = vmax.f32 %v917_v32, 0.0 }
 0x16d   : > { %v1492_v38 = vmax.f32 %v652_v35, 0.0  ;;  %v1493_v39 = vmax.f32 %v741_v36, 0.0 }
 0x16e   : > { %v1645_v40 = vadd.f32 %v1644_v26, %v1486_v54  ;;  %v1682_v4 = vadd.f32 %v1681_v27, %v1487_v37 }
 0x16f   : > { %v1572_v41 = vadd.f32 %v1571_v28, %v1492_v38  ;;  %v1609_v42 = vadd.f32 %v1608_v29, %v1493_v39 }
 0x171   : > { %v829_v43 = vpop.f32.mrf.mxu2  ;;  %v918_v44 = vpop.f32.mrf.mxu3 }
 0x172   : > { %v830_v45 = vadd.f32 %v829_v43, %v2996_v22  ;;  %v919_v46 = vadd.f32 %v918_v44, %v2998_v23  ;;  %v654_v47 = vpop.f32.mrf.mxu0  ;;  %v743_v49 = vpop.f32.mrf.mxu1 }
 0x173   : > { %v655_v50 = vadd.f32 %v654_v47, %v2984_v12  ;;  %v744_v51 = vadd.f32 %v743_v49, %v2986_v13 }
 0x174   : > { %v1494_v52 = vmax.f32 %v830_v45, 0.0  ;;  %v1495_v56 = vmax.f32 %v919_v46, 0.0 }
 0x175   : > { %v1500_v57 = vmax.f32 %v655_v50, 0.0  ;;  %v1501_v58 = vmax.f32 %v744_v51, 0.0  ;;  %2483 = vmatmul.msk.bf16.gmra.mxu0 %vm506_vm1, %v2632_v59  ;;  %2499 = vmatmul.msk.bf16.gmra.mxu1 %vm506_vm1, %v2632_v59 }
 0x176   : > { %v1646_v60 = vadd.f32 %v1645_v40, %v1494_v52  ;;  %v1683_v61 = vadd.f32 %v1682_v4, %v1495_v56  ;;  %2515 = vmatmul.msk.bf16.gmra.mxu2 %vm506_vm1, %v2632_v59  ;;  %2531 = vmatmul.msk.bf16.gmra.mxu3 %vm506_vm1, %v2632_v59 }
 0x177   : > { %v1573_v62 = vadd.f32 %v1572_v41, %v1500_v57  ;;  %v1610_v63 = vadd.f32 %v1609_v42, %v1501_v58 }
 0x179   : > { %v832_v0 = vpop.f32.mrf.mxu2  ;;  %v921_v1 = vpop.f32.mrf.mxu3 }
 0x17a   : > { %v833_v53 = vadd.f32 %v832_v0, %v2996_v22  ;;  %v922_v2 = vadd.f32 %v921_v1, %v2998_v23  ;;  %v656_v3 = vpop.f32.mrf.mxu0  ;;  %v745_v5 = vpop.f32.mrf.mxu1  ;;  %v2634_v1 = vld [vmem:[%s2880_s29 + $0x38] sm:$0xff] }
 0x17b   : > { %v657_v6 = vadd.f32 %v656_v3, %v2984_v12  ;;  %v746_v7 = vadd.f32 %v745_v5, %v2986_v13 }
 0x17c   : > { %v1502_v55 = vmax.f32 %v833_v53, 0.0  ;;  %v1503_v8 = vmax.f32 %v922_v2, 0.0 }
 0x17d   : > { %v1508_v9 = vmax.f32 %v657_v6, 0.0  ;;  %v1509_v10 = vmax.f32 %v746_v7, 0.0 }
 0x17e   : > { %v1647_v11 = vadd.f32 %v1646_v60, %v1502_v55  ;;  %v1684_v14 = vadd.f32 %v1683_v61, %v1503_v8 }
 0x17f   : > { %v1574_v15 = vadd.f32 %v1573_v62, %v1508_v9  ;;  %v1611_v16 = vadd.f32 %v1610_v63, %v1509_v10 }
 0x181   : > { %v834_v17 = vpop.f32.mrf.mxu2  ;;  %v923_v18 = vpop.f32.mrf.mxu3 }
 0x182   : > { %v835_v19 = vadd.f32 %v834_v17, %v2996_v22  ;;  %v924_v20 = vadd.f32 %v923_v18, %v2998_v23  ;;  %v659_v21 = vpop.f32.mrf.mxu0  ;;  %v748_v24 = vpop.f32.mrf.mxu1 }
 0x183   : > { %v660_v25 = vadd.f32 %v659_v21, %v2984_v12  ;;  %v749_v26 = vadd.f32 %v748_v24, %v2986_v13 }
 0x184   : > { %v1510_v27 = vmax.f32 %v835_v19, 0.0  ;;  %v1511_v28 = vmax.f32 %v924_v20, 0.0 }
 0x185   : > { %v1516_v29 = vmax.f32 %v660_v25, 0.0  ;;  %v1517_v30 = vmax.f32 %v749_v26, 0.0  ;;  %2484 = vmatmul.msk.bf16.gmra.mxu0 %vm506_vm1, %v2633_v48  ;;  %2500 = vmatmul.msk.bf16.gmra.mxu1 %vm506_vm1, %v2633_v48  ;;  %v1936_v25 = vld [vmem:[%s4014_s3 + $0x178] sm:$0xff] }
 0x186   : > { %v1648_v31 = vadd.f32 %v1647_v11, %v1510_v27  ;;  %v1685_v32 = vadd.f32 %v1684_v14, %v1511_v28  ;;  %2516 = vmatmul.msk.bf16.gmra.mxu2 %vm506_vm1, %v2633_v48  ;;  %2532 = vmatmul.msk.bf16.gmra.mxu3 %vm506_vm1, %v2633_v48  ;;  %v1904_v26 = vld [vmem:[%s4014_s3 + $0x78] sm:$0xff] }
 0x187   : > { %v1575_v33 = vadd.f32 %v1574_v15, %v1516_v29  ;;  %v1612_v34 = vadd.f32 %v1611_v16, %v1517_v30  ;;  %2075 = vmatpush.msra.mxu2 %v1936_v25  ;;  %2035 = vmatpush.msra.mxu0 %v1904_v26 }
 0x189   : > { %v837_v35 = vpop.f32.mrf.mxu2  ;;  %v926_v36 = vpop.f32.mrf.mxu3 }
 0x18a   : > { %v838_v54 = vadd.f32 %v837_v35, %v2996_v22  ;;  %v927_v37 = vadd.f32 %v926_v36, %v2998_v23  ;;  %v661_v38 = vpop.f32.mrf.mxu0  ;;  %v750_v39 = vpop.f32.mrf.mxu1 }
 0x18b   : > { %v662_v40 = vadd.f32 %v661_v38, %v2984_v12  ;;  %v751_v4 = vadd.f32 %v750_v39, %v2986_v13 }
 0x18c   : > { %v1518_v41 = vmax.f32 %v838_v54, 0.0  ;;  %v1519_v42 = vmax.f32 %v927_v37, 0.0  ;;  %v2635_v54 = vld [vmem:[%s4013_s2] sm:$0xff] }
 0x18d   : > { %v1524_v43 = vmax.f32 %v662_v40, 0.0  ;;  %v1525_v44 = vmax.f32 %v751_v4, 0.0  ;;  %v3250_v37 = vperm.slane %v2635_v54, 4  ;;  %v3252_v38 = vperm.slane %v2635_v54, 5  ;;  %v2636_v4 = vld [vmem:[%s2880_s29 + $0x40] sm:$0xff] }
 0x18e   : > { %v1649_v45 = vadd.f32 %v1648_v31, %v1518_v41  ;;  %v1686_v46 = vadd.f32 %v1685_v32, %v1519_v42  ;;  %v1920_v41 = vld [vmem:[%s4014_s3 + $0xf8] sm:$0xff] }
 0x18f   : > { %v1576_v47 = vadd.f32 %v1575_v33, %v1524_v43  ;;  %v1613_v49 = vadd.f32 %v1612_v34, %v1525_v44  ;;  %2055 = vmatpush.msra.mxu1 %v1920_v41  ;;  %v1919_v41 = vld [vmem:[%s4014_s3 + $0xf0] sm:$0xff] }
 0x191   : > { %v839_v50 = vpop.f32.mrf.mxu2  ;;  %v928_v51 = vpop.f32.mrf.mxu3  ;;  %2056 = vmatpush.msra.mxu1 %v1919_v41 }
 0x192   : > { %v840_v52 = vadd.f32 %v839_v50, %v2996_v22  ;;  %v929_v56 = vadd.f32 %v928_v51, %v2998_v23  ;;  %v664_v57 = vpop.f32.mrf.mxu0  ;;  %v753_v58 = vpop.f32.mrf.mxu1 }
 0x193   : > { %v665_v59 = vadd.f32 %v664_v57, %v2984_v12  ;;  %v754_v60 = vadd.f32 %v753_v58, %v2986_v13  ;;  %v3264_v58 = vperm.slane %v2635_v54, 6 }
 0x194   : > { %v1526_v61 = vmax.f32 %v840_v52, 0.0  ;;  %v1527_v62 = vmax.f32 %v929_v56, 0.0 }
 0x195   : > { %v1532_v63 = vmax.f32 %v665_v59, 0.0  ;;  %v1533_v0 = vmax.f32 %v754_v60, 0.0  ;;  %2485 = vmatmul.msk.bf16.gmra.mxu0 %vm506_vm1, %v2634_v1  ;;  %2501 = vmatmul.msk.bf16.gmra.mxu1 %vm506_vm1, %v2634_v1  ;;  %v3266_v59 = vperm.slane %v2635_v54, 7 }
 0x196   : > { %v1650_v53 = vadd.f32 %v1649_v45, %v1526_v61  ;;  %v1687_v2 = vadd.f32 %v1686_v46, %v1527_v62  ;;  %2517 = vmatmul.msk.bf16.gmra.mxu2 %vm506_vm1, %v2634_v1  ;;  %2533 = vmatmul.msk.bf16.gmra.mxu3 %vm506_vm1, %v2634_v1 }
 0x197   : > { %v1577_v3 = vadd.f32 %v1576_v47, %v1532_v63  ;;  %v1614_v5 = vadd.f32 %v1613_v49, %v1533_v0 }
 0x199   : > { %v842_v6 = vpop.f32.mrf.mxu2  ;;  %v931_v7 = vpop.f32.mrf.mxu3 }
 0x19a   : > { %v843_v55 = vadd.f32 %v842_v6, %v2996_v22  ;;  %v932_v8 = vadd.f32 %v931_v7, %v2998_v23  ;;  %v666_v9 = vpop.f32.mrf.mxu0  ;;  %v755_v10 = vpop.f32.mrf.mxu1 }
 0x19b   : > { %v667_v11 = vadd.f32 %v666_v9, %v2984_v12  ;;  %v756_v14 = vadd.f32 %v755_v10, %v2986_v13  ;;  %v1952_v12 = vld [vmem:[%s4014_s3 + $0x1f8] sm:$0xff] }
 0x19c   : > { %v1534_v15 = vmax.f32 %v843_v55, 0.0  ;;  %v1535_v16 = vmax.f32 %v932_v8, 0.0  ;;  %2095 = vmatpush.msra.mxu3 %v1952_v12 }
 0x19d   : > { %v1540_v17 = vmax.f32 %v667_v11, 0.0  ;;  %v1541_v18 = vmax.f32 %v756_v14, 0.0 }
 0x19e   : > { %v1651_v19 = vadd.f32 %v1650_v53, %v1534_v15  ;;  %v1688_v20 = vadd.f32 %v1687_v2, %v1535_v16 }
 0x19f   : > { %v1578_v21 = vadd.f32 %v1577_v3, %v1540_v17  ;;  %v1615_v24 = vadd.f32 %v1614_v5, %v1541_v18  ;;  %v1935_v17 = vld [vmem:[%s4014_s3 + $0x170] sm:$0xff] }
 0x1a0   : > { %v1903_v18 = vld [vmem:[%s4014_s3 + $0x70] sm:$0xff]  ;;  %2076 = vmatpush.msra.mxu2 %v1935_v17 }
 0x1a1   : > { %v1579_v13 = vrot.slane %v1578_v21, 4  ;;  %v1616_v27 = vrot.slane %v1615_v24, 4  ;;  %v844_v28 = vpop.f32.mrf.mxu2  ;;  %v933_v29 = vpop.f32.mrf.mxu3  ;;  %2036 = vmatpush.msra.mxu0 %v1903_v18 }
 0x1a2   : > { %v845_v30 = vadd.f32 %v844_v28, %v2996_v22  ;;  %v934_v48 = vadd.f32 %v933_v29, %v2998_v23  ;;  %v945_v31 = vpop.f32.mrf.mxu0  ;;  %v1034_v32 = vpop.f32.mrf.mxu1 }
 0x1a3   : > { %v1580_v33 = vadd.f32 %v1579_v13, %v1578_v21  ;;  %v1617_v34 = vadd.f32 %v1616_v27, %v1615_v24  ;;  %v946_v46 = vadd.f32 %v945_v31, %v3250_v37  ;;  %v1035_v47 = vadd.f32 %v1034_v32, %v3252_v38 }
 0x1a4   : > { %v1542_v35 = vmax.f32 %v845_v30, 0.0  ;;  %v1543_v36 = vmax.f32 %v934_v48, 0.0 }
 0x1a5   : > { %v1581_v39 = vrot.slane %v1580_v33, 2  ;;  %v1618_v40 = vrot.slane %v1617_v34, 2  ;;  %2486 = vmatmul.msk.bf16.gmra.mxu0 %vm506_vm1, %v2636_v4  ;;  %2502 = vmatmul.msk.bf16.gmra.mxu1 %vm506_vm1, %v2636_v4  ;;  %v1296_v2 = vmax.f32 %v946_v46, 0.0  ;;  %v1297_v3 = vmax.f32 %v1035_v47, 0.0 }
 0x1a6   : > { %v1652_v22 = vadd.f32 %v1651_v19, %v1542_v35  ;;  %v1689_v23 = vadd.f32 %v1688_v20, %v1543_v36  ;;  %2518 = vmatmul.msk.bf16.gmra.mxu2 %vm506_vm1, %v2636_v4  ;;  %2534 = vmatmul.msk.bf16.gmra.mxu3 %vm506_vm1, %v2636_v4  ;;  %v1951_v19 = vld [vmem:[%s4014_s3 + $0x1f0] sm:$0xff] }
 0x1a7   : > { %v1582_v42 = vadd.f32 %v1581_v39, %v1580_v33  ;;  %v1619_v43 = vadd.f32 %v1618_v40, %v1617_v34  ;;  %2096 = vmatpush.msra.mxu3 %v1951_v19  ;;  %v2637_v40 = vld [vmem:[%s2880_s29 + $0x48] sm:$0xff]  ;;  %v2638_v19 = vld [vmem:[%s2880_s29 + $0x50] sm:$0xff] }
 0x1a8   : > { %v1653_v44 = vrot.slane %v1652_v22, 4  ;;  %v1690_v45 = vrot.slane %v1689_v23, 4 }
 0x1a9   : > { %v1583_v49 = vrot.slane %v1582_v42, 1  ;;  %v1620_v50 = vrot.slane %v1619_v43, 1  ;;  %v1123_v51 = vpop.f32.mrf.mxu2  ;;  %v1212_v52 = vpop.f32.mrf.mxu3 }
 0x1aa   : > { %v1654_v56 = vadd.f32 %v1653_v44, %v1652_v22  ;;  %v1691_v57 = vadd.f32 %v1690_v45, %v1689_v23  ;;  %v947_v60 = vpop.f32.mrf.mxu0  ;;  %v1036_v61 = vpop.f32.mrf.mxu1  ;;  %v1124_v10 = vadd.f32 %v1123_v51, %v3264_v58  ;;  %v1213_v14 = vadd.f32 %v1212_v52, %v3266_v59 }
 0x1ab   : > { %v1621_v62 = vadd.f32 %v1620_v50, %v1619_v43  ;;  %v948_v63 = vadd.f32 %v947_v60, %v3250_v37  ;;  %v1037_v0 = vadd.f32 %v1036_v61, %v3252_v38  ;;  %v1584_v5 = vadd.f32 %v1583_v49, %v1582_v42 }
 0x1ac   : > { %v1655_v1 = vrot.slane %v1654_v56, 2  ;;  %v1692_v53 = vrot.slane %v1691_v57, 2  ;;  %v1298_v30 = vmax.f32 %v1124_v10, 0.0  ;;  %v1299_v48 = vmax.f32 %v1213_v14, 0.0 }
 0x1ad   : > { %v1861_v6 = vrot.slane %v1621_v62, 7  ;;  %v1304_v7 = vmax.f32 %v948_v63, 0.0  ;;  %v1305_v55 = vmax.f32 %v1037_v0, 0.0 }
 0x1ae   : > { %v1656_v8 = vadd.f32 %v1655_v1, %v1654_v56  ;;  %v1693_v9 = vadd.f32 %v1692_v53, %v1691_v57 }
 0x1af   : > { %v1869_v11 = vsel %vm1868_vm2, %v1584_v5, %v1861_v6  ;;  %v1696_v15 = vadd.f32 %v1304_v7, %v1296_v2  ;;  %v1733_v16 = vadd.f32 %v1305_v55, %v1297_v3  ;;  %v1934_v2 = vld [vmem:[%s4014_s3 + $0x168] sm:$0xff] }
 0x1b0   : > { %v1657_v20 = vrot.slane %v1656_v8, 1  ;;  %v1694_v21 = vrot.slane %v1693_v9, 1  ;;  %v1902_v3 = vld [vmem:[%s4014_s3 + $0x68] sm:$0xff]  ;;  %2077 = vmatpush.msra.mxu2 %v1934_v2 }
 0x1b1   : > { %v1125_v24 = vpop.f32.mrf.mxu2  ;;  %v1214_v25 = vpop.f32.mrf.mxu3  ;;  %v1950_v5 = vld [vmem:[%s4014_s3 + $0x1e8] sm:$0xff]  ;;  %2037 = vmatpush.msra.mxu0 %v1902_v3 }
 0x1b2   : > { %v1658_v26 = vadd.f32 %v1657_v20, %v1656_v8  ;;  %v1695_v12 = vadd.f32 %v1694_v21, %v1693_v9  ;;  %v1126_v13 = vadd.f32 %v1125_v24, %v3264_v58  ;;  %v1215_v27 = vadd.f32 %v1214_v25, %v3266_v59  ;;  %v950_v28 = vpop.f32.mrf.mxu0  ;;  %v1039_v29 = vpop.f32.mrf.mxu1  ;;  %2097 = vmatpush.msra.mxu3 %v1950_v5  ;;  %v1918_v24 = vld [vmem:[%s4014_s3 + $0xe8] sm:$0xff] }
 0x1b3   : > { %v951_v31 = vadd.f32 %v950_v28, %v3250_v37  ;;  %v1040_v32 = vadd.f32 %v1039_v29, %v3252_v38  ;;  %2057 = vmatpush.msra.mxu1 %v1918_v24 }
 0x1b4   : > { %v1862_v33 = vrot.slane %v1658_v26, 6  ;;  %v1863_v34 = vrot.slane %v1695_v12, 5  ;;  %v1306_v35 = vmax.f32 %v1126_v13, 0.0  ;;  %v1307_v36 = vmax.f32 %v1215_v27, 0.0 }
 0x1b5   : > { %v1312_v54 = vmax.f32 %v951_v31, 0.0  ;;  %v1313_v39 = vmax.f32 %v1040_v32, 0.0  ;;  %2487 = vmatmul.msk.bf16.gmra.mxu0 %vm506_vm1, %v2637_v40  ;;  %2503 = vmatmul.msk.bf16.gmra.mxu1 %vm506_vm1, %v2637_v40 }
 0x1b6   : > { %v1871_v4 = vsel %vm1870_vm3, %v1862_v33, %v1863_v34  ;;  %v1770_v22 = vadd.f32 %v1306_v35, %v1298_v30  ;;  %v1807_v23 = vadd.f32 %v1307_v36, %v1299_v48  ;;  %2519 = vmatmul.msk.bf16.gmra.mxu2 %vm506_vm1, %v2637_v40  ;;  %2535 = vmatmul.msk.bf16.gmra.mxu3 %vm506_vm1, %v2637_v40 }
 0x1b7   : > { %v3295_v42 = vsel %vm555_vm0, %v1869_v11, %v1871_v4  ;;  %v1697_v43 = vadd.f32 %v1696_v15, %v1312_v54  ;;  %v1734_v44 = vadd.f32 %v1733_v16, %v1313_v39  ;;  %v1933_v4 = vld [vmem:[%s4014_s3 + $0x160] sm:$0xff] }
 0x1b8   : > { %2078 = vmatpush.msra.mxu2 %v1933_v4 }
 0x1b9   : > { %v1128_v45 = vpop.f32.mrf.mxu2  ;;  %v1217_v46 = vpop.f32.mrf.mxu3 }
 0x1ba   : > { %v1129_v47 = vadd.f32 %v1128_v45, %v3264_v58  ;;  %v1218_v49 = vadd.f32 %v1217_v46, %v3266_v59  ;;  %v952_v50 = vpop.f32.mrf.mxu0  ;;  %v1041_v51 = vpop.f32.mrf.mxu1 }
 0x1bb   : > { %v953_v52 = vadd.f32 %v952_v50, %v3250_v37  ;;  %v1042_v56 = vadd.f32 %v1041_v51, %v3252_v38 }
 0x1bc   : > { %v1314_v57 = vmax.f32 %v1129_v47, 0.0  ;;  %v1315_v60 = vmax.f32 %v1218_v49, 0.0 }
 0x1bd   : > { %v1320_v61 = vmax.f32 %v953_v52, 0.0  ;;  %v1321_v62 = vmax.f32 %v1042_v56, 0.0 }
 0x1be   : > { %v1771_v63 = vadd.f32 %v1770_v22, %v1314_v57  ;;  %v1808_v0 = vadd.f32 %v1807_v23, %v1315_v60  ;;  %v1901_v22 = vld [vmem:[%s4014_s3 + $0x60] sm:$0xff]  ;;  %v2639_v60 = vld [vmem:[%s2880_s29 + $0x58] sm:$0xff] }
 0x1bf   : > { %v1698_v1 = vadd.f32 %v1697_v43, %v1320_v61  ;;  %v1735_v53 = vadd.f32 %v1734_v44, %v1321_v62  ;;  %v1949_v23 = vld [vmem:[%s4014_s3 + $0x1e0] sm:$0xff]  ;;  %2038 = vmatpush.msra.mxu0 %v1901_v22 }
 0x1c0   : > { %2098 = vmatpush.msra.mxu3 %v1949_v23 }
 0x1c1   : > { %v1130_v6 = vpop.f32.mrf.mxu2  ;;  %v1219_v7 = vpop.f32.mrf.mxu3 }
 0x1c2   : > { %v1131_v55 = vadd.f32 %v1130_v6, %v3264_v58  ;;  %v1220_v8 = vadd.f32 %v1219_v7, %v3266_v59  ;;  %v955_v9 = vpop.f32.mrf.mxu0  ;;  %v1044_v10 = vpop.f32.mrf.mxu1 }
 0x1c3   : > { %v956_v11 = vadd.f32 %v955_v9, %v3250_v37  ;;  %v1045_v14 = vadd.f32 %v1044_v10, %v3252_v38 }
 0x1c4   : > { %v1322_v15 = vmax.f32 %v1131_v55, 0.0  ;;  %v1323_v16 = vmax.f32 %v1220_v8, 0.0 }
 0x1c5   : > { %v1328_v17 = vmax.f32 %v956_v11, 0.0  ;;  %v1329_v18 = vmax.f32 %v1045_v14, 0.0  ;;  %2488 = vmatmul.msk.bf16.gmra.mxu0 %vm506_vm1, %v2638_v19  ;;  %2504 = vmatmul.msk.bf16.gmra.mxu1 %vm506_vm1, %v2638_v19 }
 0x1c6   : > { %v1772_v20 = vadd.f32 %v1771_v63, %v1322_v15  ;;  %v1809_v21 = vadd.f32 %v1808_v0, %v1323_v16  ;;  %2520 = vmatmul.msk.bf16.gmra.mxu2 %vm506_vm1, %v2638_v19  ;;  %2536 = vmatmul.msk.bf16.gmra.mxu3 %vm506_vm1, %v2638_v19  ;;  %v1917_v63 = vld [vmem:[%s4014_s3 + $0xe0] sm:$0xff]  ;;  %v1932_v19 = vld [vmem:[%s4014_s3 + $0x158] sm:$0xff] }
 0x1c7   : > { %v1699_v25 = vadd.f32 %v1698_v1, %v1328_v17  ;;  %v1736_v26 = vadd.f32 %v1735_v53, %v1329_v18  ;;  %2058 = vmatpush.msra.mxu1 %v1917_v63  ;;  %2079 = vmatpush.msra.mxu2 %v1932_v19 }
 0x1c9   : > { %v1133_v12 = vpop.f32.mrf.mxu2  ;;  %v1222_v13 = vpop.f32.mrf.mxu3 }
 0x1ca   : > { %v1134_v27 = vadd.f32 %v1133_v12, %v3264_v58  ;;  %v1223_v28 = vadd.f32 %v1222_v13, %v3266_v59  ;;  %v957_v29 = vpop.f32.mrf.mxu0  ;;  %v1046_v30 = vpop.f32.mrf.mxu1 }
 0x1cb   : > { %v958_v48 = vadd.f32 %v957_v29, %v3250_v37  ;;  %v1047_v31 = vadd.f32 %v1046_v30, %v3252_v38  ;;  %v2640_v30 = vld [vmem:[%s2880_s29 + $0x60] sm:$0xff] }
 0x1cc   : > { %v1330_v32 = vmax.f32 %v1134_v27, 0.0  ;;  %v1331_v33 = vmax.f32 %v1223_v28, 0.0 }
 0x1cd   : > { %v1336_v34 = vmax.f32 %v958_v48, 0.0  ;;  %v1337_v35 = vmax.f32 %v1047_v31, 0.0 }
 0x1ce   : > { %v1773_v36 = vadd.f32 %v1772_v20, %v1330_v32  ;;  %v1810_v54 = vadd.f32 %v1809_v21, %v1331_v33  ;;  %v1900_v20 = vld [vmem:[%s4014_s3 + $0x58] sm:$0xff] }
 0x1cf   : > { %v1700_v39 = vadd.f32 %v1699_v25, %v1336_v34  ;;  %v1737_v40 = vadd.f32 %v1736_v26, %v1337_v35  ;;  %v1948_v21 = vld [vmem:[%s4014_s3 + $0x1d8] sm:$0xff]  ;;  %2039 = vmatpush.msra.mxu0 %v1900_v20 }
 0x1d0   : > { %2099 = vmatpush.msra.mxu3 %v1948_v21  ;;  %v1916_v32 = vld [vmem:[%s4014_s3 + $0xd8] sm:$0xff] }
 0x1d1   : > { %v1135_v41 = vpop.f32.mrf.mxu2  ;;  %v1224_v43 = vpop.f32.mrf.mxu3  ;;  %2059 = vmatpush.msra.mxu1 %v1916_v32 }
 0x1d2   : > { %v1136_v44 = vadd.f32 %v1135_v41, %v3264_v58  ;;  %v1225_v45 = vadd.f32 %v1224_v43, %v3266_v59  ;;  %v960_v46 = vpop.f32.mrf.mxu0  ;;  %v1049_v47 = vpop.f32.mrf.mxu1  ;;  %v1931_v41 = vld [vmem:[%s4014_s3 + $0x150] sm:$0xff] }
 0x1d3   : > { %v961_v49 = vadd.f32 %v960_v46, %v3250_v37  ;;  %v1050_v50 = vadd.f32 %v1049_v47, %v3252_v38  ;;  %v1899_v43 = vld [vmem:[%s4014_s3 + $0x50] sm:$0xff]  ;;  %2080 = vmatpush.msra.mxu2 %v1931_v41 }
 0x1d4   : > { %v1338_v51 = vmax.f32 %v1136_v44, 0.0  ;;  %v1339_v52 = vmax.f32 %v1225_v45, 0.0  ;;  %v1947_v44 = vld [vmem:[%s4014_s3 + $0x1d0] sm:$0xff]  ;;  %2040 = vmatpush.msra.mxu0 %v1899_v43 }
 0x1d5   : > { %v1344_v56 = vmax.f32 %v961_v49, 0.0  ;;  %v1345_v57 = vmax.f32 %v1050_v50, 0.0  ;;  %2489 = vmatmul.msk.bf16.gmra.mxu0 %vm506_vm1, %v2639_v60  ;;  %2505 = vmatmul.msk.bf16.gmra.mxu1 %vm506_vm1, %v2639_v60 }
 0x1d6   : > { %v1774_v61 = vadd.f32 %v1773_v36, %v1338_v51  ;;  %v1811_v62 = vadd.f32 %v1810_v54, %v1339_v52  ;;  %2521 = vmatmul.msk.bf16.gmra.mxu2 %vm506_vm1, %v2639_v60  ;;  %2537 = vmatmul.msk.bf16.gmra.mxu3 %vm506_vm1, %v2639_v60 }
 0x1d7   : > { %v1701_v0 = vadd.f32 %v1700_v39, %v1344_v56  ;;  %v1738_v1 = vadd.f32 %v1737_v40, %v1345_v57  ;;  %2100 = vmatpush.msra.mxu3 %v1947_v44 }
 0x1d9   : > { %v1138_v53 = vpop.f32.mrf.mxu2  ;;  %v1227_v2 = vpop.f32.mrf.mxu3 }
 0x1da   : > { %v1139_v3 = vadd.f32 %v1138_v53, %v3264_v58  ;;  %v1228_v5 = vadd.f32 %v1227_v2, %v3266_v59  ;;  %v962_v6 = vpop.f32.mrf.mxu0  ;;  %v1051_v7 = vpop.f32.mrf.mxu1 }
 0x1db   : > { %v963_v55 = vadd.f32 %v962_v6, %v3250_v37  ;;  %v1052_v8 = vadd.f32 %v1051_v7, %v3252_v38 }
 0x1dc   : > { %v1346_v9 = vmax.f32 %v1139_v3, 0.0  ;;  %v1347_v10 = vmax.f32 %v1228_v5, 0.0  ;;  %v2641_v5 = vld [vmem:[%s2880_s29 + $0x68] sm:$0xff] }
 0x1dd   : > { %v1352_v11 = vmax.f32 %v963_v55, 0.0  ;;  %v1353_v14 = vmax.f32 %v1052_v8, 0.0  ;;  %v1915_v55 = vld [vmem:[%s4014_s3 + $0xd0] sm:$0xff] }
 0x1de   : > { %v1775_v15 = vadd.f32 %v1774_v61, %v1346_v9  ;;  %v1812_v16 = vadd.f32 %v1811_v62, %v1347_v10  ;;  %2060 = vmatpush.msra.mxu1 %v1915_v55 }
 0x1df   : > { %v1702_v17 = vadd.f32 %v1701_v0, %v1352_v11  ;;  %v1739_v18 = vadd.f32 %v1738_v1, %v1353_v14 }
 0x1e1   : > { %v1140_v24 = vpop.f32.mrf.mxu2  ;;  %v1229_v25 = vpop.f32.mrf.mxu3 }
 0x1e2   : > { %v1141_v26 = vadd.f32 %v1140_v24, %v3264_v58  ;;  %v1230_v12 = vadd.f32 %v1229_v25, %v3266_v59  ;;  %v965_v13 = vpop.f32.mrf.mxu0  ;;  %v1054_v27 = vpop.f32.mrf.mxu1 }
 0x1e3   : > { %v966_v54 = vadd.f32 %v965_v13, %v3250_v37  ;;  %v1055_v39 = vadd.f32 %v1054_v27, %v3252_v38 }
 0x1e4   : > { %v1354_v28 = vmax.f32 %v1141_v26, 0.0  ;;  %v1355_v29 = vmax.f32 %v1230_v12, 0.0 }
 0x1e5   : > { %2490 = vmatmul.msk.bf16.gmra.mxu0 %vm506_vm1, %v2640_v30  ;;  %2506 = vmatmul.msk.bf16.gmra.mxu1 %vm506_vm1, %v2640_v30  ;;  %v1360_v22 = vmax.f32 %v966_v54, 0.0  ;;  %v1361_v23 = vmax.f32 %v1055_v39, 0.0 }
 0x1e6   : > { %v1776_v48 = vadd.f32 %v1775_v15, %v1354_v28  ;;  %v1813_v31 = vadd.f32 %v1812_v16, %v1355_v29  ;;  %2522 = vmatmul.msk.bf16.gmra.mxu2 %vm506_vm1, %v2640_v30  ;;  %2538 = vmatmul.msk.bf16.gmra.mxu3 %vm506_vm1, %v2640_v30 }
 0x1e7   : > { %v1703_v57 = vadd.f32 %v1702_v17, %v1360_v22  ;;  %v1740_v60 = vadd.f32 %v1739_v18, %v1361_v23 }
 0x1e9   : > { %v1143_v33 = vpop.f32.mrf.mxu2  ;;  %v1232_v34 = vpop.f32.mrf.mxu3 }
 0x1ea   : > { %v967_v35 = vpop.f32.mrf.mxu0  ;;  %v1056_v36 = vpop.f32.mrf.mxu1  ;;  %v1144_v50 = vadd.f32 %v1143_v33, %v3264_v58  ;;  %v1233_v51 = vadd.f32 %v1232_v34, %v3266_v59  ;;  %v1930_v33 = vld [vmem:[%s4014_s3 + $0x148] sm:$0xff] }
 0x1eb   : > { %v968_v40 = vadd.f32 %v967_v35, %v3250_v37  ;;  %v1057_v4 = vadd.f32 %v1056_v36, %v3252_v38  ;;  %v1898_v34 = vld [vmem:[%s4014_s3 + $0x48] sm:$0xff]  ;;  %2081 = vmatpush.msra.mxu2 %v1930_v33 }
 0x1ec   : > { %v1362_v6 = vmax.f32 %v1144_v50, 0.0  ;;  %v1363_v7 = vmax.f32 %v1233_v51, 0.0  ;;  %v1946_v35 = vld [vmem:[%s4014_s3 + $0x1c8] sm:$0xff]  ;;  %2041 = vmatpush.msra.mxu0 %v1898_v34 }
 0x1ed   : > { %v1368_v45 = vmax.f32 %v968_v40, 0.0  ;;  %v1369_v46 = vmax.f32 %v1057_v4, 0.0  ;;  %2101 = vmatpush.msra.mxu3 %v1946_v35  ;;  %v1914_v51 = vld [vmem:[%s4014_s3 + $0xc8] sm:$0xff] }
 0x1ee   : > { %v1777_v16 = vadd.f32 %v1776_v48, %v1362_v6  ;;  %v1814_v17 = vadd.f32 %v1813_v31, %v1363_v7  ;;  %2061 = vmatpush.msra.mxu1 %v1914_v51 }
 0x1ef   : > { %v1704_v1 = vadd.f32 %v1703_v57, %v1368_v45  ;;  %v1741_v53 = vadd.f32 %v1740_v60, %v1369_v46 }
 0x1f1   : > { %v1145_v47 = vpop.f32.mrf.mxu2  ;;  %v1234_v49 = vpop.f32.mrf.mxu3 }
 0x1f2   : > { %v970_v52 = vpop.f32.mrf.mxu0  ;;  %v1059_v56 = vpop.f32.mrf.mxu1  ;;  %v1146_v63 = vadd.f32 %v1145_v47, %v3264_v58  ;;  %v1235_v0 = vadd.f32 %v1234_v49, %v3266_v59  ;;  %v2642_v47 = vld [vmem:[%s2880_s29 + $0x70] sm:$0xff] }
 0x1f3   : > { %v971_v61 = vadd.f32 %v970_v52, %v3250_v37  ;;  %v1060_v62 = vadd.f32 %v1059_v56, %v3252_v38 }
 0x1f4   : > { %v1370_v10 = vmax.f32 %v1146_v63, 0.0  ;;  %v1371_v11 = vmax.f32 %v1235_v0, 0.0 }
 0x1f5   : > { %v1376_v2 = vmax.f32 %v971_v61, 0.0  ;;  %v1377_v3 = vmax.f32 %v1060_v62, 0.0  ;;  %2491 = vmatmul.msk.bf16.gmra.mxu0 %vm506_vm1, %v2641_v5  ;;  %2507 = vmatmul.msk.bf16.gmra.mxu1 %vm506_vm1, %v2641_v5 }
 0x1f6   : > { %2523 = vmatmul.msk.bf16.gmra.mxu2 %vm506_vm1, %v2641_v5  ;;  %2539 = vmatmul.msk.bf16.gmra.mxu3 %vm506_vm1, %v2641_v5  ;;  %v1778_v26 = vadd.f32 %v1777_v16, %v1370_v10  ;;  %v1815_v12 = vadd.f32 %v1814_v17, %v1371_v11  ;;  %v1929_v10 = vld [vmem:[%s4014_s3 + $0x140] sm:$0xff] }
 0x1f7   : > { %v1705_v8 = vadd.f32 %v1704_v1, %v1376_v2  ;;  %v1742_v9 = vadd.f32 %v1741_v53, %v1377_v3  ;;  %v1897_v11 = vld [vmem:[%s4014_s3 + $0x40] sm:$0xff]  ;;  %2082 = vmatpush.msra.mxu2 %v1929_v10 }
 0x1f8   : > { %2042 = vmatpush.msra.mxu0 %v1897_v11 }
 0x1f9   : > { %v1148_v14 = vpop.f32.mrf.mxu2  ;;  %v1237_v15 = vpop.f32.mrf.mxu3 }
 0x1fa   : > { %v1149_v18 = vadd.f32 %v1148_v14, %v3264_v58  ;;  %v1238_v19 = vadd.f32 %v1237_v15, %v3266_v59  ;;  %v972_v20 = vpop.f32.mrf.mxu0  ;;  %v1061_v21 = vpop.f32.mrf.mxu1  ;;  %v1945_v14 = vld [vmem:[%s4014_s3 + $0x1c0] sm:$0xff] }
 0x1fb   : > { %v973_v24 = vadd.f32 %v972_v20, %v3250_v37  ;;  %v1062_v25 = vadd.f32 %v1061_v21, %v3252_v38  ;;  %2102 = vmatpush.msra.mxu3 %v1945_v14 }
 0x1fc   : > { %v1378_v13 = vmax.f32 %v1149_v18, 0.0  ;;  %v1379_v27 = vmax.f32 %v1238_v19, 0.0 }
 0x1fd   : > { %v1384_v28 = vmax.f32 %v973_v24, 0.0  ;;  %v1385_v29 = vmax.f32 %v1062_v25, 0.0 }
 0x1fe   : > { %v1779_v30 = vadd.f32 %v1778_v26, %v1378_v13  ;;  %v1816_v32 = vadd.f32 %v1815_v12, %v1379_v27  ;;  %v2643_v27 = vld [vmem:[%s2880_s29 + $0x78] sm:$0xff] }
 0x1ff   : > { %v1706_v48 = vadd.f32 %v1705_v8, %v1384_v28  ;;  %v1743_v31 = vadd.f32 %v1742_v9, %v1385_v29 }
 0x201   : > { %v1150_v36 = vpop.f32.mrf.mxu2  ;;  %v1239_v54 = vpop.f32.mrf.mxu3 }
 0x202   : > { %v1151_v39 = vadd.f32 %v1150_v36, %v3264_v58  ;;  %v1240_v40 = vadd.f32 %v1239_v54, %v3266_v59  ;;  %v975_v4 = vpop.f32.mrf.mxu0  ;;  %v1064_v22 = vpop.f32.mrf.mxu1 }
 0x203   : > { %v976_v23 = vadd.f32 %v975_v4, %v3250_v37  ;;  %v1065_v41 = vadd.f32 %v1064_v22, %v3252_v38 }
 0x204   : > { %v1386_v43 = vmax.f32 %v1151_v39, 0.0  ;;  %v1387_v44 = vmax.f32 %v1240_v40, 0.0 }
 0x205   : > { %v1392_v45 = vmax.f32 %v976_v23, 0.0  ;;  %v1393_v46 = vmax.f32 %v1065_v41, 0.0  ;;  %2492 = vmatmul.msk.bf16.gmra.mxu0 %vm506_vm1, %v2642_v47  ;;  %2508 = vmatmul.msk.bf16.gmra.mxu1 %vm506_vm1, %v2642_v47 }
 0x206   : > { %v1780_v49 = vadd.f32 %v1779_v30, %v1386_v43  ;;  %v1817_v50 = vadd.f32 %v1816_v32, %v1387_v44  ;;  %2524 = vmatmul.msk.bf16.gmra.mxu2 %vm506_vm1, %v2642_v47  ;;  %2540 = vmatmul.msk.bf16.gmra.mxu3 %vm506_vm1, %v2642_v47  ;;  %v1913_v30 = vld [vmem:[%s4014_s3 + $0xc0] sm:$0xff]  ;;  %v1928_v47 = vld [vmem:[%s4014_s3 + $0x138] sm:$0xff] }
 0x207   : > { %v1707_v52 = vadd.f32 %v1706_v48, %v1392_v45  ;;  %v1744_v56 = vadd.f32 %v1743_v31, %v1393_v46  ;;  %2062 = vmatpush.msra.mxu1 %v1913_v30  ;;  %2083 = vmatpush.msra.mxu2 %v1928_v47 }
 0x209   : > { %v1153_v57 = vpop.f32.mrf.mxu2  ;;  %v1242_v60 = vpop.f32.mrf.mxu3 }
 0x20a   : > { %v1154_v61 = vadd.f32 %v1153_v57, %v3264_v58  ;;  %v1243_v62 = vadd.f32 %v1242_v60, %v3266_v59  ;;  %v977_v63 = vpop.f32.mrf.mxu0  ;;  %v1066_v0 = vpop.f32.mrf.mxu1 }
 0x20b   : > { %v978_v1 = vadd.f32 %v977_v63, %v3250_v37  ;;  %v1067_v53 = vadd.f32 %v1066_v0, %v3252_v38 }
 0x20c   : > { %v1394_v2 = vmax.f32 %v1154_v61, 0.0  ;;  %v1395_v3 = vmax.f32 %v1243_v62, 0.0 }
 0x20d   : > { %v1400_v5 = vmax.f32 %v978_v1, 0.0  ;;  %v1401_v6 = vmax.f32 %v1067_v53, 0.0 }
 0x20e   : > { %v1781_v7 = vadd.f32 %v1780_v49, %v1394_v2  ;;  %v1818_v55 = vadd.f32 %v1817_v50, %v1395_v3  ;;  %v1896_v49 = vld [vmem:[%s4014_s3 + $0x38] sm:$0xff] }
 0x20f   : > { %v1708_v8 = vadd.f32 %v1707_v52, %v1400_v5  ;;  %v1745_v9 = vadd.f32 %v1744_v56, %v1401_v6  ;;  %v1944_v50 = vld [vmem:[%s4014_s3 + $0x1b8] sm:$0xff]  ;;  %2043 = vmatpush.msra.mxu0 %v1896_v49 }
 0x210   : > { %2103 = vmatpush.msra.mxu3 %v1944_v50  ;;  %v1912_v6 = vld [vmem:[%s4014_s3 + $0xb8] sm:$0xff] }
 0x211   : > { %v1155_v15 = vpop.f32.mrf.mxu2  ;;  %v1244_v16 = vpop.f32.mrf.mxu3  ;;  %2063 = vmatpush.msra.mxu1 %v1912_v6 }
 0x212   : > { %v1156_v17 = vadd.f32 %v1155_v15, %v3264_v58  ;;  %v1245_v18 = vadd.f32 %v1244_v16, %v3266_v59  ;;  %v980_v19 = vpop.f32.mrf.mxu0  ;;  %v1069_v20 = vpop.f32.mrf.mxu1 }
 0x213   : > { %v981_v21 = vadd.f32 %v980_v19, %v3250_v37  ;;  %v1070_v24 = vadd.f32 %v1069_v20, %v3252_v38 }
 0x214   : > { %v1402_v25 = vmax.f32 %v1156_v17, 0.0  ;;  %v1403_v26 = vmax.f32 %v1245_v18, 0.0 }
 0x215   : > { %v1408_v12 = vmax.f32 %v981_v21, 0.0  ;;  %v1409_v13 = vmax.f32 %v1070_v24, 0.0  ;;  %2493 = vmatmul.msk.bf16.gmra.mxu0 %vm506_vm1, %v2643_v27  ;;  %2509 = vmatmul.msk.bf16.gmra.mxu1 %vm506_vm1, %v2643_v27 }
 0x216   : > { %v1782_v28 = vadd.f32 %v1781_v7, %v1402_v25  ;;  %v1819_v29 = vadd.f32 %v1818_v55, %v1403_v26  ;;  %2525 = vmatmul.msk.bf16.gmra.mxu2 %vm506_vm1, %v2643_v27  ;;  %2541 = vmatmul.msk.bf16.gmra.mxu3 %vm506_vm1, %v2643_v27  ;;  %v1895_v27 = vld [vmem:[%s4014_s3 + $0x30] sm:$0xff] }
 0x217   : > { %v1709_v32 = vadd.f32 %v1708_v8, %v1408_v12  ;;  %v1746_v48 = vadd.f32 %v1745_v9, %v1409_v13  ;;  %v1927_v13 = vld [vmem:[%s4014_s3 + $0x130] sm:$0xff]  ;;  %2044 = vmatpush.msra.mxu0 %v1895_v27 }
 0x218   : > { %2084 = vmatpush.msra.mxu2 %v1927_v13 }
 0x219   : > { %v1158_v31 = vpop.f32.mrf.mxu2  ;;  %v1247_v33 = vpop.f32.mrf.mxu3 }
 0x21a   : > { %v1159_v34 = vadd.f32 %v1158_v31, %v3264_v58  ;;  %v1248_v35 = vadd.f32 %v1247_v33, %v3266_v59  ;;  %v982_v36 = vpop.f32.mrf.mxu0  ;;  %v1071_v54 = vpop.f32.mrf.mxu1 }
 0x21b   : > { %v983_v39 = vadd.f32 %v982_v36, %v3250_v37  ;;  %v1072_v40 = vadd.f32 %v1071_v54, %v3252_v38 }
 0x21c   : > { %v1410_v4 = vmax.f32 %v1159_v34, 0.0  ;;  %v1411_v22 = vmax.f32 %v1248_v35, 0.0 }
 0x21d   : > { %v1416_v23 = vmax.f32 %v983_v39, 0.0  ;;  %v1417_v41 = vmax.f32 %v1072_v40, 0.0 }
 0x21e   : > { %v1783_v43 = vadd.f32 %v1782_v28, %v1410_v4  ;;  %v1820_v44 = vadd.f32 %v1819_v29, %v1411_v22  ;;  %v1943_v28 = vld [vmem:[%s4014_s3 + $0x1b0] sm:$0xff] }
 0x21f   : > { %v1710_v45 = vadd.f32 %v1709_v32, %v1416_v23  ;;  %v1747_v46 = vadd.f32 %v1746_v48, %v1417_v41  ;;  %2104 = vmatpush.msra.mxu3 %v1943_v28  ;;  %v1911_v23 = vld [vmem:[%s4014_s3 + $0xb0] sm:$0xff] }
 0x220   : > { %2064 = vmatpush.msra.mxu1 %v1911_v23 }
 0x221   : > { %v1160_v51 = vpop.f32.mrf.mxu2  ;;  %v1249_v52 = vpop.f32.mrf.mxu3 }
 0x222   : > { %v1161_v56 = vadd.f32 %v1160_v51, %v3264_v58  ;;  %v1250_v57 = vadd.f32 %v1249_v52, %v3266_v59  ;;  %v985_v60 = vpop.f32.mrf.mxu0  ;;  %v1074_v61 = vpop.f32.mrf.mxu1 }
 0x223   : > { %v986_v62 = vadd.f32 %v985_v60, %v3250_v37  ;;  %v1075_v63 = vadd.f32 %v1074_v61, %v3252_v38 }
 0x224   : > { %v1418_v0 = vmax.f32 %v1161_v56, 0.0  ;;  %v1419_v1 = vmax.f32 %v1250_v57, 0.0 }
 0x225   : > { %v1424_v53 = vmax.f32 %v986_v62, 0.0  ;;  %v1425_v2 = vmax.f32 %v1075_v63, 0.0 }
 0x226   : > { %v1784_v3 = vadd.f32 %v1783_v43, %v1418_v0  ;;  %v1821_v5 = vadd.f32 %v1820_v44, %v1419_v1 }
 0x227   : > { %v1711_v7 = vadd.f32 %v1710_v45, %v1424_v53  ;;  %v1748_v55 = vadd.f32 %v1747_v46, %v1425_v2  ;;  %v1926_v53 = vld [vmem:[%s4014_s3 + $0x128] sm:$0xff] }
 0x228   : > { %v1894_v2 = vld [vmem:[%s4014_s3 + $0x28] sm:$0xff]  ;;  %2085 = vmatpush.msra.mxu2 %v1926_v53 }
 0x229   : > { %v1163_v8 = vpop.f32.mrf.mxu2  ;;  %v1252_v9 = vpop.f32.mrf.mxu3  ;;  %2045 = vmatpush.msra.mxu0 %v1894_v2 }
 0x22a   : > { %v1164_v10 = vadd.f32 %v1163_v8, %v3264_v58  ;;  %v1253_v11 = vadd.f32 %v1252_v9, %v3266_v59  ;;  %v987_v14 = vpop.f32.mrf.mxu0  ;;  %v1076_v15 = vpop.f32.mrf.mxu1 }
 0x22b   : > { %v988_v16 = vadd.f32 %v987_v14, %v3250_v37  ;;  %v1077_v17 = vadd.f32 %v1076_v15, %v3252_v38 }
 0x22c   : > { %v1426_v18 = vmax.f32 %v1164_v10, 0.0  ;;  %v1427_v19 = vmax.f32 %v1253_v11, 0.0 }
 0x22d   : > { %v1432_v20 = vmax.f32 %v988_v16, 0.0  ;;  %v1433_v21 = vmax.f32 %v1077_v17, 0.0 }
 0x22e   : > { %v1785_v24 = vadd.f32 %v1784_v3, %v1426_v18  ;;  %v1822_v25 = vadd.f32 %v1821_v5, %v1427_v19  ;;  %v1942_v3 = vld [vmem:[%s4014_s3 + $0x1a8] sm:$0xff] }
 0x22f   : > { %v1712_v26 = vadd.f32 %v1711_v7, %v1432_v20  ;;  %v1749_v12 = vadd.f32 %v1748_v55, %v1433_v21  ;;  %2105 = vmatpush.msra.mxu3 %v1942_v3  ;;  %v1910_v20 = vld [vmem:[%s4014_s3 + $0xa8] sm:$0xff]  ;;  %v1907_v3 = vld [vmem:[%s4014_s3 + $0x90] sm:$0xff] }
 0x230   : > { %2065 = vmatpush.msra.mxu1 %v1910_v20 }
 0x231   : > { %v1165_v29 = vpop.f32.mrf.mxu2  ;;  %v1254_v30 = vpop.f32.mrf.mxu3 }
 0x232   : > { %v1166_v32 = vadd.f32 %v1165_v29, %v3264_v58  ;;  %v1255_v48 = vadd.f32 %v1254_v30, %v3266_v59  ;;  %v990_v31 = vpop.f32.mrf.mxu0  ;;  %v1079_v33 = vpop.f32.mrf.mxu1 }
 0x233   : > { %v991_v34 = vadd.f32 %v990_v31, %v3250_v37  ;;  %v1080_v35 = vadd.f32 %v1079_v33, %v3252_v38  ;;  %v1925_v31 = vld [vmem:[%s4014_s3 + $0x120] sm:$0xff] }
 0x234   : > { %v1434_v36 = vmax.f32 %v1166_v32, 0.0  ;;  %v1435_v54 = vmax.f32 %v1255_v48, 0.0  ;;  %v1893_v33 = vld [vmem:[%s4014_s3 + $0x20] sm:$0xff]  ;;  %2086 = vmatpush.msra.mxu2 %v1925_v31 }
 0x235   : > { %v1440_v39 = vmax.f32 %v991_v34, 0.0  ;;  %v1441_v40 = vmax.f32 %v1080_v35, 0.0  ;;  %v1941_v34 = vld [vmem:[%s4014_s3 + $0x1a0] sm:$0xff]  ;;  %2046 = vmatpush.msra.mxu0 %v1893_v33 }
 0x236   : > { %v1786_v4 = vadd.f32 %v1785_v24, %v1434_v36  ;;  %v1823_v22 = vadd.f32 %v1822_v25, %v1435_v54  ;;  %2106 = vmatpush.msra.mxu3 %v1941_v34 }
 0x237   : > { %v1713_v41 = vadd.f32 %v1712_v26, %v1440_v39  ;;  %v1750_v43 = vadd.f32 %v1749_v12, %v1441_v40  ;;  %v1909_v40 = vld [vmem:[%s4014_s3 + $0xa0] sm:$0xff] }
 0x238   : > { %2066 = vmatpush.msra.mxu1 %v1909_v40 }
 0x239   : > { %v1168_v44 = vpop.f32.mrf.mxu2  ;;  %v1257_v45 = vpop.f32.mrf.mxu3 }
 0x23a   : > { %v1169_v46 = vadd.f32 %v1168_v44, %v3264_v58  ;;  %v1258_v47 = vadd.f32 %v1257_v45, %v3266_v59  ;;  %v992_v49 = vpop.f32.mrf.mxu0  ;;  %v1081_v50 = vpop.f32.mrf.mxu1  ;;  %v1892_v44 = vld [vmem:[%s4014_s3 + $0x18] sm:$0xff] }
 0x23b   : > { %v993_v51 = vadd.f32 %v992_v49, %v3250_v37  ;;  %v1082_v52 = vadd.f32 %v1081_v50, %v3252_v38  ;;  %v1940_v45 = vld [vmem:[%s4014_s3 + $0x198] sm:$0xff]  ;;  %2047 = vmatpush.msra.mxu0 %v1892_v44 }
 0x23c   : > { %v1442_v56 = vmax.f32 %v1169_v46, 0.0  ;;  %v1443_v57 = vmax.f32 %v1258_v47, 0.0  ;;  %2107 = vmatpush.msra.mxu3 %v1940_v45  ;;  %v1937_v45 = vld [vmem:[%s4014_s3 + $0x180] sm:$0xff] }
 0x23d   : > { %v1448_v60 = vmax.f32 %v993_v51, 0.0  ;;  %v1449_v61 = vmax.f32 %v1082_v52, 0.0  ;;  %v1908_v51 = vld [vmem:[%s4014_s3 + $0x98] sm:$0xff] }
 0x23e   : > { %v1787_v62 = vadd.f32 %v1786_v4, %v1442_v56  ;;  %v1824_v63 = vadd.f32 %v1823_v22, %v1443_v57  ;;  %2067 = vmatpush.msra.mxu1 %v1908_v51 }
 0x23f   : > { %v1714_v0 = vadd.f32 %v1713_v41, %v1448_v60  ;;  %v1751_v1 = vadd.f32 %v1750_v43, %v1449_v61  ;;  %v1924_v43 = vld [vmem:[%s4014_s3 + $0x118] sm:$0xff]  ;;  %v1923_v61 = vld [vmem:[%s4014_s3 + $0x110] sm:$0xff] }
 0x240   : > { %2087 = vmatpush.msra.mxu2 %v1924_v43  ;;  %2068 = vmatpush.msra.mxu1 %v1907_v3 }
 0x241   : > { %v1170_v5 = vpop.f32.mrf.mxu2  ;;  %v1259_v6 = vpop.f32.mrf.mxu3 }
 0x242   : > { %v1171_v7 = vadd.f32 %v1170_v5, %v3264_v58  ;;  %v1260_v55 = vadd.f32 %v1259_v6, %v3266_v59  ;;  %v995_v8 = vpop.f32.mrf.mxu0  ;;  %v1084_v9 = vpop.f32.mrf.mxu1  ;;  %2088 = vmatpush.msra.mxu2 %v1923_v61 }
 0x243   : > { %v996_v10 = vadd.f32 %v995_v8, %v3250_v37  ;;  %v1085_v11 = vadd.f32 %v1084_v9, %v3252_v38 }
 0x244   : > { %v1450_v14 = vmax.f32 %v1171_v7, 0.0  ;;  %v1451_v15 = vmax.f32 %v1260_v55, 0.0 }
 0x245   : > { %v1456_v16 = vmax.f32 %v996_v10, 0.0  ;;  %v1457_v17 = vmax.f32 %v1085_v11, 0.0 }
 0x246   : > { %v1788_v18 = vadd.f32 %v1787_v62, %v1450_v14  ;;  %v1825_v19 = vadd.f32 %v1824_v63, %v1451_v15  ;;  %v1891_v62 = vld [vmem:[%s4014_s3 + $0x10] sm:$0xff] }
 0x247   : > { %v3507_v21 = vadd.f32 %v1714_v0, %v1456_v16  ;;  %v3509_v24 = vadd.f32 %v1751_v1, %v1457_v17  ;;  %v1939_v63 = vld [vmem:[%s4014_s3 + $0x190] sm:$0xff]  ;;  %2048 = vmatpush.msra.mxu0 %v1891_v62  ;;  %v2000_v62 = vld [vmem:[%s4014_s3 + $0x378] sm:$0xff] }
 0x248   : > { %2108 = vmatpush.msra.mxu3 %v1939_v63 }
 0x249   : > { %v1173_v25 = vpop.f32.mrf.mxu2  ;;  %v1262_v26 = vpop.f32.mrf.mxu3 }
 0x24a   : > { %v1174_v12 = vadd.f32 %v1173_v25, %v3264_v58  ;;  %v1263_v13 = vadd.f32 %v1262_v26, %v3266_v59  ;;  %v997_v27 = vpop.f32.mrf.mxu0  ;;  %v1086_v28 = vpop.f32.mrf.mxu1 }
 0x24b   : > { %v998_v8 = vadd.f32 %v997_v27, %v3250_v37  ;;  %v1087_v9 = vadd.f32 %v1086_v28, %v3252_v38  ;;  %v1922_v28 = vld [vmem:[%s4014_s3 + $0x108] sm:$0xff] }
 0x24c   : > { %v1458_v29 = vmax.f32 %v1174_v12, 0.0  ;;  %v1459_v30 = vmax.f32 %v1263_v13, 0.0  ;;  %2089 = vmatpush.msra.mxu2 %v1922_v28  ;;  %v1982_v28 = vld [vmem:[%s4014_s3 + $0x2e8] sm:$0xff] }
 0x24d   : > { %v1464_v14 = vmax.f32 %v998_v8, 0.0  ;;  %v1967_v8 = vld [vmem:[%s4014_s3 + $0x270] sm:$0xff] }
 0x24e   : > { %v3513_v32 = vadd.f32 %v1788_v18, %v1458_v29  ;;  %v3515_v48 = vadd.f32 %v1825_v19, %v1459_v30  ;;  %v1465_v18 = vmax.f32 %v1087_v9, 0.0  ;;  %v1890_v29 = vld [vmem:[%s4014_s3 + $0x8] sm:$0xff]  ;;  %v1983_v9 = vld [vmem:[%s4014_s3 + $0x2f0] sm:$0xff] }
 0x24f   : > { %v1938_v30 = vld [vmem:[%s4014_s3 + $0x188] sm:$0xff]  ;;  %2049 = vmatpush.msra.mxu0 %v1890_v29 }
 0x250   : > { %2109 = vmatpush.msra.mxu3 %v1938_v30  ;;  %v1998_v29 = vld [vmem:[%s4014_s3 + $0x368] sm:$0xff] }
 0x251   : > { %v1175_v35 = vpop.f32.mrf.mxu2  ;;  %v1264_v36 = vpop.f32.mrf.mxu3 }
 0x252   : > { %v1000_v54 = vpop.f32.mrf.mxu0  ;;  %v1089_v39 = vpop.f32.mrf.mxu1  ;;  %v1176_v10 = vadd.f32 %v1175_v35, %v3264_v58  ;;  %v1265_v11 = vadd.f32 %v1264_v36, %v3266_v59  ;;  %v1906_v35 = vld [vmem:[%s4014_s3 + $0x88] sm:$0xff]  ;;  %v1716_v36 = vadd.f32 %v3507_v21, %v1464_v14  ;;  %2110 = vmatpush.msra.mxu3 %v1937_v45 }
 0x253   : > { %v1001_v15 = vadd.f32 %v1000_v54, %v3250_v37  ;;  %v1090_v16 = vadd.f32 %v1089_v39, %v3252_v38  ;;  %2069 = vmatpush.msra.mxu1 %v1906_v35 }
 0x254   : > { %v1466_v26 = vmax.f32 %v1176_v10, 0.0  ;;  %v1467_v31 = vmax.f32 %v1265_v11, 0.0 }
 0x255   : > { %v1472_v54 = vmax.f32 %v1001_v15, 0.0  ;;  %v1473_v39 = vmax.f32 %v1090_v16, 0.0 }
 0x256   : > { %v1827_v63 = vadd.f32 %v3515_v48, %v1467_v31  ;;  %v1999_v48 = vld [vmem:[%s4014_s3 + $0x370] sm:$0xff] }
 0x257   : > { %v1717_v10 = vadd.f32 %v1716_v36, %v1472_v54  ;;  %v2014_v36 = vld [vmem:[%s4014_s3 + $0x3e8] sm:$0xff] }
 0x259   : > { %v1178_v4 = vpop.f32.mrf.mxu2  ;;  %v1267_v22 = vpop.f32.mrf.mxu3 }
 0x25a   : > { %v1002_v23 = vpop.f32.mrf.mxu0  ;;  %v1091_v41 = vpop.f32.mrf.mxu1  ;;  %v1179_v17 = vadd.f32 %v1178_v4, %v3264_v58  ;;  %v1268_v19 = vadd.f32 %v1267_v22, %v3266_v59  ;;  %v1889_v4 = vld [vmem:[%s4014_s3] sm:$0xff] }
 0x25b   : > { %v3592_v12 = vadd.f32 %v1002_v23, %v3250_v37  ;;  %v3608_v33 = vadd.f32 %v1091_v41, %v3252_v38  ;;  %v1905_v22 = vld [vmem:[%s4014_s3 + $0x80] sm:$0xff]  ;;  %v1753_v41 = vadd.f32 %v3509_v24, %v1465_v18  ;;  %2050 = vmatpush.msra.mxu0 %v1889_v4  ;;  %v1984_v24 = vld [vmem:[%s4014_s3 + $0x2f8] sm:$0xff] }
 0x25c   : > { %v1474_v40 = vmax.f32 %v1179_v17, 0.0  ;;  %v1921_v23 = vld [vmem:[%s4014_s3 + $0x100] sm:$0xff]  ;;  %v1475_v21 = vmax.f32 %v1268_v19, 0.0  ;;  %2070 = vmatpush.msra.mxu1 %v1905_v22 }
 0x25d   : > { %2090 = vmatpush.msra.mxu2 %v1921_v23  ;;  %v1480_v51 = vmax.f32 %v3592_v12, 0.0  ;;  %v1481_v3 = vmax.f32 %v3608_v33, 0.0  ;;  %v1754_v11 = vadd.f32 %v1753_v41, %v1473_v39  ;;  %v1966_v12 = vld [vmem:[%s4014_s3 + $0x268] sm:$0xff]  ;;  %v1981_v22 = vld [vmem:[%s4014_s3 + $0x2e0] sm:$0xff] }
 0x25e   : > { %2135 = vmatpush.msrb.mxu1 %v1984_v24  ;;  %v1828_v15 = vadd.f32 %v1827_v63, %v1475_v21  ;;  %v1997_v23 = vld [vmem:[%s4014_s3 + $0x360] sm:$0xff] }
 0x25f   : > { %2155 = vmatpush.msrb.mxu2 %v2000_v62  ;;  %v1755_v54 = vadd.f32 %v1754_v11, %v1481_v3 }
 0x260   : > { %2136 = vmatpush.msrb.mxu1 %v1983_v9 }
 0x261   : > { %v1180_v46 = vpop.f32.mrf.mxu2  ;;  %v1269_v47 = vpop.f32.mrf.mxu3  ;;  %2156 = vmatpush.msrb.mxu2 %v1999_v48  ;;  %v2011_v48 = vld [vmem:[%s4014_s3 + $0x3d0] sm:$0xff] }
 0x262   : > { %v1005_v49 = vpop.f32.mrf.mxu0  ;;  %v3538_v50 = vpop.f32.mrf.mxu1  ;;  %v3611_v34 = vadd.f32 %v1180_v46, %v3264_v58  ;;  %v3628_v43 = vadd.f32 %v1269_v47, %v3266_v59  ;;  %v1968_v46 = vld [vmem:[%s4014_s3 + $0x278] sm:$0xff]  ;;  %v1790_v47 = vadd.f32 %v3513_v32, %v1466_v26  ;;  %2137 = vmatpush.msrb.mxu1 %v1982_v28 }
 0x263   : > { %v3631_v44 = vadd.f32 %v1005_v49, %v3250_v37  ;;  %v3646_v49 = vadd.f32 %v3538_v50, %v3252_v38  ;;  %v2016_v32 = vld [vmem:[%s4014_s3 + $0x3f8] sm:$0xff]  ;;  %2115 = vmatpush.msrb.mxu0 %v1968_v46  ;;  %2157 = vmatpush.msrb.mxu2 %v1998_v29 }
 0x264   : > { %v1482_v50 = vmax.f32 %v3611_v34, 0.0  ;;  %v1791_v14 = vadd.f32 %v1790_v47, %v1474_v40  ;;  %2175 = vmatpush.msrb.mxu3 %v2016_v32  ;;  %v1483_v16 = vmax.f32 %v3628_v43, 0.0  ;;  %v2013_v43 = vld [vmem:[%s4014_s3 + $0x3e0] sm:$0xff]  ;;  %2138 = vmatpush.msrb.mxu1 %v1981_v22 }
 0x265   : > { %v1488_v17 = vmax.f32 %v3631_v44, 0.0  ;;  %2116 = vmatpush.msrb.mxu0 %v1967_v8  ;;  %v1489_v30 = vmax.f32 %v3646_v49, 0.0  ;;  %2158 = vmatpush.msrb.mxu2 %v1997_v23 }
 0x266   : > { %v1792_v39 = vadd.f32 %v1791_v14, %v1482_v50  ;;  %v1829_v44 = vadd.f32 %v1828_v15, %v1483_v16  ;;  %v1979_v50 = vld [vmem:[%s4014_s3 + $0x2d0] sm:$0xff]  ;;  %v1978_v16 = vld [vmem:[%s4014_s3 + $0x2c8] sm:$0xff] }
 0x267   : > { %2117 = vmatpush.msrb.mxu0 %v1966_v12  ;;  %v1756_v24 = vadd.f32 %v1755_v54, %v1489_v30  ;;  %v1993_v54 = vld [vmem:[%s4014_s3 + $0x340] sm:$0xff] }
 0x269   : > { %v3543_v52 = vpop.f32.mrf.mxu2  ;;  %v3545_v56 = vpop.f32.mrf.mxu3 }
 0x26a   : > { %v3547_v57 = vpop.f32.mrf.mxu0  ;;  %v3549_v60 = vpop.f32.mrf.mxu1  ;;  %v3650_v61 = vadd.f32 %v3543_v52, %v3264_v58  ;;  %v3663_v52 = vadd.f32 %v3545_v56, %v3266_v59  ;;  %v2015_v56 = vld [vmem:[%s4014_s3 + $0x3f0] sm:$0xff] }
 0x26b   : > { %v3681_v18 = vadd.f32 %v3547_v57, %v3250_v37  ;;  %v1718_v57 = vadd.f32 %v1717_v10, %v1480_v51  ;;  %v3700_v33 = vadd.f32 %v3549_v60, %v3252_v38  ;;  %2176 = vmatpush.msrb.mxu3 %v2015_v56  ;;  %v1965_v60 = vld [vmem:[%s4014_s3 + $0x260] sm:$0xff] }
 0x26c   : > { %v1490_v31 = vmax.f32 %v3650_v61, 0.0  ;;  %v1491_v40 = vmax.f32 %v3663_v52, 0.0  ;;  %2118 = vmatpush.msrb.mxu0 %v1965_v60  ;;  %v2012_v61 = vld [vmem:[%s4014_s3 + $0x3d8] sm:$0xff]  ;;  %v1995_v52 = vld [vmem:[%s4014_s3 + $0x350] sm:$0xff]  ;;  %v2009_v60 = vld [vmem:[%s4014_s3 + $0x3c0] sm:$0xff] }
 0x26d   : > { %2177 = vmatpush.msrb.mxu3 %v2014_v36  ;;  %v1719_v45 = vadd.f32 %v1718_v57, %v1488_v17  ;;  %v1496_v46 = vmax.f32 %v3681_v18, 0.0  ;;  %v1497_v51 = vmax.f32 %v3700_v33, 0.0  ;;  %v2010_v57 = vld [vmem:[%s4014_s3 + $0x3c8] sm:$0xff]  ;;  %v1977_v36 = vld [vmem:[%s4014_s3 + $0x2c0] sm:$0xff] }
 0x26e   : > { %v1793_v47 = vadd.f32 %v1792_v39, %v1490_v31  ;;  %v1830_v62 = vadd.f32 %v1829_v44, %v1491_v40  ;;  %v1992_v44 = vld [vmem:[%s4014_s3 + $0x338] sm:$0xff] }
 0x26f   : > { %2178 = vmatpush.msrb.mxu3 %v2013_v43  ;;  %v1720_v10 = vadd.f32 %v1719_v45, %v1496_v46  ;;  %v1757_v17 = vadd.f32 %v1756_v24, %v1497_v51  ;;  %v1976_v43 = vld [vmem:[%s4014_s3 + $0x2b8] sm:$0xff] }
 0x271   : > { %v3560_v0 = vpop.f32.mrf.mxu2  ;;  %v3562_v1 = vpop.f32.mrf.mxu3  ;;  %2179 = vmatpush.msrb.mxu3 %v2012_v61  ;;  %v1975_v61 = vld [vmem:[%s4014_s3 + $0x2b0] sm:$0xff] }
 0x272   : > { %v3564_v53 = vpop.f32.mrf.mxu0  ;;  %v3566_v2 = vpop.f32.mrf.mxu1  ;;  %v3712_v4 = vadd.f32 %v3560_v0, %v3264_v58  ;;  %v3725_v41 = vadd.f32 %v3562_v1, %v3266_v59  ;;  %v1964_v1 = vld [vmem:[%s4014_s3 + $0x258] sm:$0xff] }
 0x273   : > { %v3729_v0 = vadd.f32 %v3564_v53, %v3250_v37  ;;  %v3733_v21 = vadd.f32 %v3566_v2, %v3252_v38  ;;  %v1980_v53 = vld [vmem:[%s4014_s3 + $0x2d8] sm:$0xff]  ;;  %2119 = vmatpush.msrb.mxu0 %v1964_v1  ;;  %2180 = vmatpush.msrb.mxu3 %v2011_v48  ;;  %v1990_v48 = vld [vmem:[%s4014_s3 + $0x328] sm:$0xff] }
 0x274   : > { %v1996_v2 = vld [vmem:[%s4014_s3 + $0x358] sm:$0xff]  ;;  %v1498_v32 = vmax.f32 %v3712_v4, 0.0  ;;  %2139 = vmatpush.msrb.mxu1 %v1980_v53 }
 0x275   : > { %v1504_v8 = vmax.f32 %v3729_v0, 0.0  ;;  %2159 = vmatpush.msrb.mxu2 %v1996_v2  ;;  %2181 = vmatpush.msrb.mxu3 %v2010_v57  ;;  %v2008_v2 = vld [vmem:[%s4014_s3 + $0x3b8] sm:$0xff]  ;;  %v2005_v57 = vld [vmem:[%s4014_s3 + $0x3a0] sm:$0xff] }
 0x276   : > { %2140 = vmatpush.msrb.mxu1 %v1979_v50  ;;  %v1794_v30 = vadd.f32 %v1793_v47, %v1498_v32 }
 0x277   : > { %2160 = vmatpush.msrb.mxu2 %v1995_v52  ;;  %v1721_v40 = vadd.f32 %v1720_v10, %v1504_v8  ;;  %2182 = vmatpush.msrb.mxu3 %v2009_v60 }
 0x278   : > { %2141 = vmatpush.msrb.mxu1 %v1978_v16 }
 0x279   : > { %v3571_v5 = vpop.f32.mrf.mxu2  ;;  %v3573_v6 = vpop.f32.mrf.mxu3  ;;  %2183 = vmatpush.msrb.mxu3 %v2008_v2 }
 0x27a   : > { %v3575_v7 = vpop.f32.mrf.mxu0  ;;  %v3577_v55 = vpop.f32.mrf.mxu1  ;;  %v3759_v63 = vadd.f32 %v3571_v5, %v3264_v58  ;;  %v1499_v5 = vmax.f32 %v3725_v41, 0.0  ;;  %v3786_v11 = vadd.f32 %v3573_v6, %v3266_v59  ;;  %v1994_v6 = vld [vmem:[%s4014_s3 + $0x348] sm:$0xff]  ;;  %2142 = vmatpush.msrb.mxu1 %v1977_v36 }
 0x27b   : > { %v3751_v49 = vadd.f32 %v3575_v7, %v3250_v37  ;;  %v3763_v3 = vadd.f32 %v3577_v55, %v3252_v38  ;;  %v1963_v7 = vld [vmem:[%s4014_s3 + $0x250] sm:$0xff]  ;;  %v1505_v55 = vmax.f32 %v3733_v21, 0.0  ;;  %2161 = vmatpush.msrb.mxu2 %v1994_v6  ;;  %v1960_v21 = vld [vmem:[%s4014_s3 + $0x238] sm:$0xff]  ;;  %v2006_v6 = vld [vmem:[%s4014_s3 + $0x3a8] sm:$0xff] }
 0x27c   : > { %2120 = vmatpush.msrb.mxu0 %v1963_v7  ;;  %v1506_v31 = vmax.f32 %v3759_v63, 0.0  ;;  %v1831_v39 = vadd.f32 %v1830_v62, %v1499_v5  ;;  %v1507_v22 = vmax.f32 %v3786_v11, 0.0  ;;  %2143 = vmatpush.msrb.mxu1 %v1976_v43  ;;  %v1991_v62 = vld [vmem:[%s4014_s3 + $0x330] sm:$0xff] }
 0x27d   : > { %v1513_v33 = vmax.f32 %v3763_v3, 0.0  ;;  %v1758_v4 = vadd.f32 %v1757_v17, %v1505_v55  ;;  %2162 = vmatpush.msrb.mxu2 %v1993_v54  ;;  %v2007_v3 = vld [vmem:[%s4014_s3 + $0x3b0] sm:$0xff]  ;;  %v1957_v17 = vld [vmem:[%s4014_s3 + $0x220] sm:$0xff] }
 0x27e   : > { %v1795_v24 = vadd.f32 %v1794_v30, %v1506_v31  ;;  %v1832_v7 = vadd.f32 %v1831_v39, %v1507_v22  ;;  %2144 = vmatpush.msrb.mxu1 %v1975_v61  ;;  %2184 = vmatpush.msrb.mxu3 %v2007_v3  ;;  %v1986_v61 = vld [vmem:[%s4014_s3 + $0x308] sm:$0xff]  ;;  %v1953_v3 = vld [vmem:[%s4014_s3 + $0x200] sm:$0xff] }
 0x27f   : > { %v1759_v47 = vadd.f32 %v1758_v4, %v1513_v33  ;;  %2163 = vmatpush.msrb.mxu2 %v1992_v44  ;;  %v1972_v4 = vld [vmem:[%s4014_s3 + $0x298] sm:$0xff] }
 0x280   : > { %2185 = vmatpush.msrb.mxu3 %v2006_v6 }
 0x281   : > { %v3587_v20 = vpop.f32.mrf.mxu2  ;;  %v3589_v25 = vpop.f32.mrf.mxu3  ;;  %2164 = vmatpush.msrb.mxu2 %v1991_v62  ;;  %v2002_v62 = vld [vmem:[%s4014_s3 + $0x388] sm:$0xff] }
 0x282   : > { %v3594_v13 = vpop.f32.mrf.mxu0  ;;  %v3596_v27 = vpop.f32.mrf.mxu1  ;;  %v3806_v18 = vadd.f32 %v3587_v20, %v3264_v58  ;;  %v3854_v1 = vadd.f32 %v3589_v25, %v3266_v59  ;;  %v1959_v25 = vld [vmem:[%s4014_s3 + $0x230] sm:$0xff]  ;;  %2186 = vmatpush.msrb.mxu3 %v2005_v57 }
 0x283   : > { %v3779_v9 = vadd.f32 %v3594_v13, %v3250_v37  ;;  %v3790_v14 = vadd.f32 %v3596_v27, %v3252_v38  ;;  %v1962_v13 = vld [vmem:[%s4014_s3 + $0x248] sm:$0xff]  ;;  %v1512_v27 = vmax.f32 %v3751_v49, 0.0  ;;  %2165 = vmatpush.msrb.mxu2 %v1990_v48 }
 0x284   : > { %2121 = vmatpush.msrb.mxu0 %v1962_v13  ;;  %v1514_v46 = vmax.f32 %v3806_v18, 0.0  ;;  %v1515_v11 = vmax.f32 %v3854_v1, 0.0  ;;  %v2003_v1 = vld [vmem:[%s4014_s3 + $0x390] sm:$0xff] }
 0x285   : > { %v1521_v23 = vmax.f32 %v3790_v14, 0.0  ;;  %v1722_v45 = vadd.f32 %v1721_v40, %v1512_v27  ;;  %v1973_v27 = vld [vmem:[%s4014_s3 + $0x2a0] sm:$0xff]  ;;  %v1956_v40 = vld [vmem:[%s4014_s3 + $0x218] sm:$0xff] }
 0x286   : > { %v1796_v10 = vadd.f32 %v1795_v24, %v1514_v46  ;;  %v1833_v54 = vadd.f32 %v1832_v7, %v1515_v11  ;;  %v1987_v46 = vld [vmem:[%s4014_s3 + $0x310] sm:$0xff]  ;;  %v1969_v7 = vld [vmem:[%s4014_s3 + $0x280] sm:$0xff] }
 0x287   : > { %v1760_v50 = vadd.f32 %v1759_v47, %v1521_v23 }
 0x289   : > { %v3683_v19 = vpop.f32.mrf.mxu2  ;;  %v3685_v26 = vpop.f32.mrf.mxu3 }
 0x28a   : > { %v3702_v34 = vpop.f32.mrf.mxu0  ;;  %v3704_v35 = vpop.f32.mrf.mxu1  ;;  %v3862_v51 = vadd.f32 %v3683_v19, %v3264_v58  ;;  %v3876_v19 = vadd.f32 %v3685_v26, %v3266_v59  ;;  %v1958_v26 = vld [vmem:[%s4014_s3 + $0x228] sm:$0xff] }
 0x28b   : > { %v3810_v12 = vadd.f32 %v3702_v34, %v3250_v37  ;;  %v3819_v20 = vadd.f32 %v3704_v35, %v3252_v38  ;;  %v1961_v34 = vld [vmem:[%s4014_s3 + $0x240] sm:$0xff]  ;;  %v1520_v35 = vmax.f32 %v3779_v9, 0.0  ;;  %v1974_v9 = vld [vmem:[%s4014_s3 + $0x2a8] sm:$0xff] }
 0x28c   : > { %2122 = vmatpush.msrb.mxu0 %v1961_v34  ;;  %v1522_v18 = vmax.f32 %v3862_v51, 0.0  ;;  %2145 = vmatpush.msrb.mxu1 %v1974_v9  ;;  %v1523_v30 = vmax.f32 %v3876_v19, 0.0 }
 0x28d   : > { %v1528_v53 = vmax.f32 %v3810_v12, 0.0  ;;  %v1529_v49 = vmax.f32 %v3819_v20, 0.0  ;;  %v1723_v32 = vadd.f32 %v1722_v45, %v1520_v35  ;;  %v1988_v35 = vld [vmem:[%s4014_s3 + $0x318] sm:$0xff] }
 0x28e   : > { %2123 = vmatpush.msrb.mxu0 %v1960_v21  ;;  %2146 = vmatpush.msrb.mxu1 %v1973_v27  ;;  %v1797_v60 = vadd.f32 %v1796_v10, %v1522_v18  ;;  %v1971_v21 = vld [vmem:[%s4014_s3 + $0x290] sm:$0xff]  ;;  %v1834_v43 = vadd.f32 %v1833_v54, %v1523_v30 }
 0x28f   : > { %v1724_v14 = vadd.f32 %v1723_v32, %v1528_v53  ;;  %v1761_v12 = vadd.f32 %v1760_v50, %v1529_v49  ;;  %v1954_v53 = vld [vmem:[%s4014_s3 + $0x208] sm:$0xff] }
 0x290   : > { %2124 = vmatpush.msrb.mxu0 %v1959_v25  ;;  %2147 = vmatpush.msrb.mxu1 %v1972_v4  ;;  %v1970_v25 = vld [vmem:[%s4014_s3 + $0x288] sm:$0xff] }
 0x291   : > { %v1195_v56 = vpop.f32.mrf.mxu2  ;;  %v3792_v15 = vpop.f32.mrf.mxu3 }
 0x292   : > { %v1020_v28 = vpop.f32.mrf.mxu0  ;;  %v1109_v29 = vpop.f32.mrf.mxu1  ;;  %v3879_v63 = vadd.f32 %v1195_v56, %v3264_v58  ;;  %v1285_v56 = vadd.f32 %v3792_v15, %v3266_v59  ;;  %2125 = vmatpush.msrb.mxu0 %v1958_v26  ;;  %2148 = vmatpush.msrb.mxu1 %v1971_v21 }
 0x293   : > { %v3837_v41 = vadd.f32 %v1020_v28, %v3250_v37  ;;  %v3840_v0 = vadd.f32 %v1109_v29, %v3252_v38  ;;  %v1989_v29 = vld [vmem:[%s4014_s3 + $0x320] sm:$0xff] }
 0x294   : > { %v1530_v31 = vmax.f32 %v3879_v63, 0.0  ;;  %2126 = vmatpush.msrb.mxu0 %v1957_v17  ;;  %v1531_v39 = vmax.f32 %v1285_v56, 0.0  ;;  %2166 = vmatpush.msrb.mxu2 %v1989_v29 }
 0x295   : > { %v1536_v52 = vmax.f32 %v3837_v41, 0.0  ;;  %v1537_v5 = vmax.f32 %v3840_v0, 0.0  ;;  %v2004_v41 = vld [vmem:[%s4014_s3 + $0x398] sm:$0xff]  ;;  %v1955_v0 = vld [vmem:[%s4014_s3 + $0x210] sm:$0xff]  ;;  %2149 = vmatpush.msrb.mxu1 %v1970_v25 }
 0x296   : > { %2127 = vmatpush.msrb.mxu0 %v1956_v40  ;;  %2167 = vmatpush.msrb.mxu2 %v1988_v35  ;;  %v1798_v2 = vadd.f32 %v1797_v60, %v1530_v31  ;;  %v1835_v32 = vadd.f32 %v1834_v43, %v1531_v39 }
 0x297   : > { %v1762_v20 = vadd.f32 %v1761_v12, %v1537_v5  ;;  %2187 = vmatpush.msrb.mxu3 %v2004_v41  ;;  %2150 = vmatpush.msrb.mxu1 %v1969_v7 }
 0x298   : > { %2128 = vmatpush.msrb.mxu0 %v1955_v0  ;;  %2168 = vmatpush.msrb.mxu2 %v1987_v46 }
 0x299   : > { %v1198_v8 = vpop.f32.mrf.mxu2  ;;  %v1287_v55 = vpop.f32.mrf.mxu3  ;;  %2188 = vmatpush.msrb.mxu3 %v2003_v1 }
 0x29a   : > { %v1022_v13 = vpop.f32.mrf.mxu0  ;;  %v1111_v16 = vpop.f32.mrf.mxu1  ;;  %v1199_v33 = vadd.f32 %v1198_v8, %v3264_v58  ;;  %2129 = vmatpush.msrb.mxu0 %v1954_v53  ;;  %2169 = vmatpush.msrb.mxu2 %v1986_v61 }
 0x29b   : > { %v1023_v15 = vadd.f32 %v1022_v13, %v3250_v37  ;;  %v1112_v28 = vadd.f32 %v1111_v16, %v3252_v38  ;;  %v1288_v37 = vadd.f32 %v1287_v55, %v3266_v59  ;;  %v1725_v38 = vadd.f32 %v1724_v14, %v1536_v52  ;;  %2189 = vmatpush.msrb.mxu3 %v2002_v62 }
 0x29c   : > { %v1538_v44 = vmax.f32 %v1199_v33, 0.0  ;;  %2130 = vmatpush.msrb.mxu0 %v1953_v3 }
 0x29d   : > { %v1544_v34 = vmax.f32 %v1023_v15, 0.0  ;;  %v1545_v36 = vmax.f32 %v1112_v28, 0.0  ;;  %v1539_v45 = vmax.f32 %v1288_v37, 0.0 }
 0x29e   : > { %v1799_v5 = vadd.f32 %v1798_v2, %v1538_v44 }
 0x29f   : > { %v1726_v22 = vadd.f32 %v1725_v38, %v1544_v34  ;;  %v1763_v23 = vadd.f32 %v1762_v20, %v1545_v36  ;;  %v1836_v8 = vadd.f32 %v1835_v32, %v1539_v45 }
 0x2a1   : > { %v1727_v24 = vrot.slane %v1726_v22, 4  ;;  %v1764_v47 = vrot.slane %v1763_v23, 4  ;;  %v1200_v51 = vpop.f32.mrf.mxu2  ;;  %v1289_v49 = vpop.f32.mrf.mxu3 }
 0x2a2   : > { %v1201_v19 = vadd.f32 %v1200_v51, %v3264_v58  ;;  %v1290_v63 = vadd.f32 %v1289_v49, %v3266_v59  ;;  %v1985_v58 = vld [vmem:[%s4014_s3 + $0x300] sm:$0xff] }
 0x2a3   : > { %v1728_v50 = vadd.f32 %v1727_v24, %v1726_v22  ;;  %v1765_v52 = vadd.f32 %v1764_v47, %v1763_v23  ;;  %v2001_v59 = vld [vmem:[%s4014_s3 + $0x380] sm:$0xff]  ;;  %2170 = vmatpush.msrb.mxu2 %v1985_v58 }
 0x2a4   : > { %v1546_v55 = vmax.f32 %v1201_v19, 0.0  ;;  %v1547_v26 = vmax.f32 %v1290_v63, 0.0  ;;  %2190 = vmatpush.msrb.mxu3 %v2001_v59 }
 0x2a5   : > { %v1729_v9 = vrot.slane %v1728_v50, 2  ;;  %v1766_v48 = vrot.slane %v1765_v52, 2 }
 0x2a6   : > { %v1800_v10 = vadd.f32 %v1799_v5, %v1546_v55  ;;  %v1837_v11 = vadd.f32 %v1836_v8, %v1547_v26 }
 0x2a7   : > { %v1730_v14 = vadd.f32 %v1729_v9, %v1728_v50  ;;  %v1767_v56 = vadd.f32 %v1766_v48, %v1765_v52 }
 0x2a8   : > { %v1801_v13 = vrot.slane %v1800_v10, 4  ;;  %v1838_v16 = vrot.slane %v1837_v11, 4 }
 0x2a9   : > { %v1731_v6 = vrot.slane %v1730_v14, 1  ;;  %v1768_v17 = vrot.slane %v1767_v56, 1 }
 0x2aa   : > { %v1802_v27 = vadd.f32 %v1801_v13, %v1800_v10  ;;  %v1839_v18 = vadd.f32 %v1838_v16, %v1837_v11 }
 0x2ab   : > { %v1732_v12 = vadd.f32 %v1731_v6, %v1730_v14  ;;  %v1769_v15 = vadd.f32 %v1768_v17, %v1767_v56 }
 0x2ac   : > { %v1803_v28 = vrot.slane %v1802_v27, 2  ;;  %v1840_v29 = vrot.slane %v1839_v18, 2 }
 0x2ad   : > { %v1864_v57 = vrot.slane %v1732_v12, 4  ;;  %v1865_v30 = vrot.slane %v1769_v15, 3 }
 0x2ae   : > { %v1804_v31 = vadd.f32 %v1803_v28, %v1802_v27  ;;  %v1841_v33 = vadd.f32 %v1840_v29, %v1839_v18 }
 0x2af   : > { %v1874_v37 = vsel %vm1873_vm4, %v1864_v57, %v1865_v30 }
 0x2b0   : > { %v1805_v38 = vrot.slane %v1804_v31, 1  ;;  %v1842_v20 = vrot.slane %v1841_v33, 1 }
 0x2b2   : > { %v1806_v34 = vadd.f32 %v1805_v38, %v1804_v31  ;;  %v1843_v36 = vadd.f32 %v1842_v20, %v1841_v33 }
 0x2b4   : > { %v1866_v54 = vrot.slane %v1806_v34, 2  ;;  %v1867_v39 = vrot.slane %v1843_v36, 1 }
 0x2b6   : > { %v1876_v40 = vsel %vm1875_vm5, %v1866_v54, %v1867_v39 }
 0x2b7   : > { %v1878_v4 = vsel %vm1877_vm6, %v1874_v37, %v1876_v40 }
 0x2b8   : > { %v1880_v35 = vsel %vm1879_vm7, %v3295_v42, %v1878_v4  ;;  %v2017_v42 = vld [vmem:[%s4015_s4] sm:$0x1] }
 0x2b9   : > { %v1888_v60 = vmul.f32 0.00390625, %v1880_v35 }
 0x2bb   : > { %v2019_v22 = vperm.slane %v1888_v60, 0  ;;  %v2020_v23 = vperm.slane %v1888_v60, 1  ;;  %v2021_v41 = vperm.slane %v1888_v60, 2  ;;  %v2022_v0 = vperm.slane %v1888_v60, 3 }
 0x2bc   : > { %v2023_v21 = vperm.slane %v1888_v60, 4  ;;  %v2024_v43 = vperm.slane %v1888_v60, 5  ;;  %v2025_v44 = vperm.slane %v1888_v60, 6  ;;  %v2026_v45 = vperm.slane %v1888_v60, 7 }
 0x2bd   : > { %2051 = vmatmul.f32.vlgmr.msra.gmra.mxu0 %v2019_v22  ;;  %2071 = vmatmul.f32.vlgmr.msra.gmra.mxu1 %v2020_v23 }
 0x2be   : > { %2091 = vmatmul.f32.vlgmr.msra.gmra.mxu2 %v2021_v41  ;;  %2111 = vmatmul.f32.vlgmr.msra.gmra.mxu3 %v2022_v0 }
 0x2c5   : > { %2131 = vmatmul.f32.vlgmr.msrb.gmra.mxu0 %v2023_v21  ;;  %2151 = vmatmul.f32.vlgmr.msrb.gmra.mxu1 %v2024_v43 }
 0x2c6   : > { %2171 = vmatmul.f32.vlgmr.msrb.gmra.mxu2 %v2025_v44  ;;  %2191 = vmatmul.f32.vlgmr.msrb.gmra.mxu3 %v2026_v45 }
 0x33a   : > { %v2052_v46 = vpop.f32.mrf.mxu0  ;;  %v2072_v53 = vpop.f32.mrf.mxu1 }
 0x33b   : > { %v2053_v1 = vadd.f32 %v2052_v46, %v2017_v42 }
 0x33d   : > { %v2073_v2 = vadd.f32 %v2072_v53, %v2053_v1 }
 0x341   : > { %v2092_v24 = vpop.f32.mrf.mxu2  ;;  %v2112_v47 = vpop.f32.mrf.mxu3 }
 0x342   : > { %v2093_v51 = vadd.f32 %v2092_v24, %v2073_v2  ;;  %v2132_v25 = vpop.f32.mrf.mxu0  ;;  %v2152_v62 = vpop.f32.mrf.mxu1 }
 0x344   : > { %v2113_v49 = vadd.f32 %v2112_v47, %v2093_v51 }
 0x346   : > { %v2133_v61 = vadd.f32 %v2132_v25, %v2113_v49 }
 0x348   : > { %v2153_v32 = vadd.f32 %v2152_v62, %v2133_v61 }
 0x349   : > { %v2172_v19 = vpop.f32.mrf.mxu2  ;;  %v2192_v3 = vpop.f32.mrf.mxu3 }
 0x34a   : > { %v2173_v63 = vadd.f32 %v2172_v19, %v2153_v32 }
 0x34c   : > { %v2193_v7 = vadd.f32 %v2192_v3, %v2173_v63 }
 0x34e   : > { %2196 = vst.msk [vmem:[%s239_s11] sm:$0x1] %vm2195_vm8, %v2193_v7 }
 0x34f   : > { %2671 = shalt.err (!%p2668_p5)
}
 0x350   : > { %2577 = dma.vmem_to_hbm [thread:$0]  (%p2794_p4), %s2209_s12, 16, %s2211_s13, %s2198_s14  }
 0x351 PF: > { %p2583_p6 = scmp.ge.s32.totalorder %s2722_s23, 2  ;;  %s2222_s7 = sand.u32 1, %s2702_s18  }
 0x352   : > { %s2223_s8 = scalar_lea.sflag [#allocation4], %s2222_s7 }
 0x353   : > { %p2580_p7 = pnand %p2583_p6, %p2801_p8 }
 0x355   : > { %p2581_p9 = pneg %p2580_p7 }
 0x357   : > { %2697 = dma.done.wait (%p2581_p9), %s2223_s8, 16  }
 0x358   : > { %2699 = vsyncadd (%p2581_p9), %s2223_s8, 4294967280  ;;  %s18_s23 = sadd.s32 1, %s2722_s23   ;;  %s4019_s18 = smov %s2706_s19 }
 0x359   : > { %p15_p10 = scmp.ge.s32.totalorder %s18_s23, 4   ;;  %s4020_s19 = smov %s2710_s20 }
 0x35a   : > { %s4021_s20 = smov %s2807_s6  ;;  %s4022_s21 = smov %s2718_s22 }
 0x35b   : > { %s4023_s22 = smov %s4025_s26  ;;  %17 = sbr.rel (!%p15_p10) target bundleno = 4 (0x4), region = 83 }
 0x360   :  { %2228 = vsyncpa [#allocation4], 1 }
 0x361   :  { %2230 = vsyncpa [#allocation4 + $0x1], 1 }

</bundles_post_ra>
